<compile_context>
chip_gen: v6e
topology: v6e:2x2x1
jax: 0.10.0
libtpu: 0.0.40
codegen_flags: <defaults>
</compile_context>

<pallas_src>
import functools

import jax
import jax.numpy as jnp
from jax import lax
from jax.experimental import pallas as pl
from jax.experimental.pallas import tpu as pltpu

WINDOW = 11
C1 = 0.01 ** 2
C2 = 0.03 ** 2


def _ssim_kernel(bandv_ref, bandw_ref, pred_ref, targ_ref, out_ref, *, inv_k2):
    """One grid step: Bv x Bw planes packed into a single (Bv*H, Bw*W) slab.

    bandv_ref: (Bv*H, Bv*H) block-diagonal vertical window band (0/1 f32).
    bandw_ref: (Bw*W, Bw*W) block-diagonal horizontal window band (0/1 f32).
    pred_ref / targ_ref: (Bv*H, Bw*W) unpadded, lane-packed planes.
    out_ref:   (1, 128) lane-dense row holding this block's SSIM sum
               (broadcast over the row; [0, 0] is read back in the wrapper).
    """
    p = pred_ref[...]
    t = targ_ref[...]
    bv = bandv_ref[...]
    bw = bandw_ref[...]

    def pool(x):
        # Both window sums run on the MXU; zero-padding / border handling lives
        # in the 0/1 bands (block-diagonal => never mixes planes).
        # NOTE(perf review item 2): Mosaic's dot lowering only supports
        # DEFAULT/HIGHEST; HIGH (3-pass) is rejected and DEFAULT (1-pass bf16)
        # is too inaccurate for the 1e-5 tolerance, so HIGHEST is kept.
        v = jnp.dot(bv, x, preferred_element_type=jnp.float32,
                    precision=lax.Precision.HIGHEST)
        h = jnp.dot(v, bw, preferred_element_type=jnp.float32,
                    precision=lax.Precision.HIGHEST)
        return h * inv_k2

    mu_p = pool(p)
    mu_t = pool(t)
    s = p + t
    d = p - t
    S = pool(s * s)            # E[(p + t)^2]
    D = pool(d * d)            # E[(p - t)^2]

    mu_pt = mu_p * mu_t
    mu_p2 = mu_p * mu_p
    mu_t2 = mu_t * mu_t
    sigma_pt = 0.25 * (S - D) - mu_pt              # cov(p, t)
    sigma_sum = 0.5 * (S + D) - mu_p2 - mu_t2      # var(p) + var(t)

    num = (2.0 * mu_pt + C1) * (2.0 * sigma_pt + C2)
    den = (mu_p2 + mu_t2 + C1) * (sigma_sum + C2)

    # EUP reciprocal seed (+ one Newton step): den > 0 and well-conditioned, so
    # this is accurate to ~1e-8 relative -- far below the 1e-5 tolerance.
    r = pl.reciprocal(den, approx=True)
    r = r * (2.0 - den * r)
    ssim = num * r

    out_ref[...] = jnp.full((1, 128), jnp.sum(ssim), dtype=jnp.float32)


def _round_up(x, m):
    return -(-x // m) * m


def _chip_defaults():
    """Generation-aware tiling caps / VMEM limits (trace-time only)."""
    kind = ""
    try:
        kind = jax.devices()[0].device_kind.lower()
    except Exception:  # defensive: fall through to conservative defaults
        pass
    if "v5 lite" in kind or "v5e" in kind or "v5lite" in kind:
        # 128-wide MXU, 128 MiB physical VMEM.
        return dict(bh_cap=128, vmem_limit_bytes=64 * 1024 * 1024,
                    block_budget_bytes=12 * 1024 * 1024)
    if "v6" in kind or "trillium" in kind:
        # 256-wide MXU, 128 MiB physical VMEM.
        return dict(bh_cap=256, vmem_limit_bytes=64 * 1024 * 1024,
                    block_budget_bytes=16 * 1024 * 1024)
    # v7x (64 MiB VMEM per TC, 2 TCs) or unknown chip: conservative.
    return dict(bh_cap=256, vmem_limit_bytes=32 * 1024 * 1024,
                block_budget_bytes=10 * 1024 * 1024)


def _block_vmem_bytes(bh, lanes):
    """Conservative per-block f32 VMEM footprint, counting lane padding."""
    lanes_pad = _round_up(lanes, 128)
    bh_pad = _round_up(bh, 8)
    map_bytes = bh_pad * lanes_pad * 4
    band_v_bytes = bh_pad * _round_up(bh, 128) * 4
    band_w_bytes = _round_up(lanes, 8) * lanes_pad * 4
    return (2 * 2 * map_bytes                    # x, y inputs, double-buffered
            + 2 * (band_v_bytes + band_w_bytes)  # bands (allocated 2-deep)
            + 10 * map_bytes                     # live f32 temporaries
            + 2 * 8 * 128 * 4)                   # partial-sum output


def _choose_packing(num_planes, H, W, bh_cap, budget_bytes):
    """Pick (Bv, Bw): planes stacked along sublanes (Bv) and lanes (Bw).

    Preference order (lexicographic, all candidates must fit the VMEM budget):
      1. lane fill of the 128-lane vreg (biggest lever for small W),
      2. at least 2 grid blocks when possible (keeps both v7x TCs busy),
      3. Bv*H within the MXU-native M cap (band matmul waste is O(Bv)),
      4. larger Bv*H (fewer grid steps to amortize per-step overhead).
    """
    best = None
    best_score = None
    for group in range(1, num_planes + 1):
        if num_planes % group:
            continue
        nblocks = num_planes // group
        for bw in range(1, group + 1):
            if group % bw:
                continue
            bv = group // bw
            lanes = bw * W
            bh = bv * H
            if bw > 1 and lanes > 512:
                continue                       # no benefit past a few vregs wide
            if _block_vmem_bytes(bh, lanes) > budget_bytes:
                continue
            score = (
                min(lanes, 128),                               # lane fill
                1 if (nblocks >= 2 or num_planes == 1) else 0,  # megacore
                1 if bh <= bh_cap else 0,                       # MXU-native M
                bh,                                             # fewer steps
            )
            if best_score is None or score > best_score:
                best_score = score
                best = (bv, bw)
    if best is None:
        # TODO(synk): halo / row-strip tiling for planes too large to fit one
        # block in the VMEM budget; fall back to one whole plane per step.
        return 1, 1
    return best


def _block_band(nblk, size, pad):
    """Block-diagonal 0/1 band over `nblk` sub-planes of extent `size`."""
    n = nblk * size
    idx = jnp.arange(n)
    blk = idx // size
    pos = idx % size
    return ((blk[:, None] == blk[None, :])
            & (jnp.abs(pos[:, None] - pos[None, :]) <= pad)).astype(jnp.float32)


def ssim_loss(pred, target, window_size=WINDOW):
    """Equivalent of SSIMLoss(window_size).forward(pred, target) for NCHW."""
    N, C, H, W = pred.shape
    P = N * C
    pad = window_size // 2

    pred = pred.astype(jnp.float32)
    target = target.astype(jnp.float32)

    cfg = _chip_defaults()
    bv, bw = _choose_packing(P, H, W, cfg["bh_cap"], cfg["block_budget_bytes"])
    group = bv * bw
    num_blocks = P // group
    BH = bv * H
    LW = bw * W

    # Layout plumbing only (no compute hoisted into the wrapper): stack bv
    # planes along sublanes and bw planes along lanes -> (num_blocks, BH, LW).
    def to_blocks(a):
        a = a.reshape(num_blocks, bv, bw, H, W)
        a = jnp.transpose(a, (0, 1, 3, 2, 4))
        return a.reshape(num_blocks, BH, LW)

    x = to_blocks(pred.reshape(P, H, W))
    y = to_blocks(target.reshape(P, H, W))

    band_v = _block_band(bv, H, pad)   # (BH, BH)
    band_w = _block_band(bw, W, pad)   # (LW, LW)

    kernel = functools.partial(
        _ssim_kernel, inv_k2=1.0 / float(window_size * window_size))

    partial_sums = pl.pallas_call(
        kernel,
        out_shape=jax.ShapeDtypeStruct((num_blocks, 1, 128), jnp.float32),
        grid_spec=pltpu.PrefetchScalarGridSpec(
            num_scalar_prefetch=0,
            grid=(num_blocks,),
            in_specs=[
                pl.BlockSpec((BH, BH), lambda i: (0, 0)),       # band_v (resident)
                pl.BlockSpec((LW, LW), lambda i: (0, 0)),       # band_w (resident)
                pl.BlockSpec((None, BH, LW), lambda i: (i, 0, 0)),
                pl.BlockSpec((None, BH, LW), lambda i: (i, 0, 0)),
            ],
            out_specs=pl.BlockSpec((None, 1, 128), lambda i: (i, 0, 0)),
        ),
        compiler_params=pltpu.CompilerParams(
            dimension_semantics=("parallel",),          # blocks are independent
            vmem_limit_bytes=cfg["vmem_limit_bytes"],
        ),
    )(band_v, band_w, x, y)

    total = jnp.sum(partial_sums[:, 0, 0])
    mean_ssim = total / jnp.float32(P * H * W)
    return 1.0 - mean_ssim


def _ssim_loss_reference(pred, target, window_size=WINDOW):
    """Pure-JAX reference (same math as the PyTorch module)."""
    pad = window_size // 2

    def avg_pool(x):
        s = lax.reduce_window(
            x, 0.0, lax.add,
            window_dimensions=(1, 1, window_size, window_size),
            window_strides=(1, 1, 1, 1),
            padding=((0, 0), (0, 0), (pad, pad), (pad, pad)))
        return s / (window_size * window_size)

    mu_p = avg_pool(pred)
    mu_t = avg_pool(target)
    sp = avg_pool(pred * pred) - mu_p * mu_p
    st = avg_pool(target * target) - mu_t * mu_t
    spt = avg_pool(pred * target) - mu_p * mu_t
    ssim = ((2 * mu_p * mu_t + C1) * (2 * spt + C2)
            / ((mu_p ** 2 + mu_t ** 2 + C1) * (sp + st + C2)))
    return 1.0 - jnp.mean(ssim)


if __name__ == "__main__":
    key = jax.random.PRNGKey(0)
    k1, k2 = jax.random.split(key)
    N, C, H, W = 2, 4, 16, 16
    pred = jax.random.uniform(k1, (N, C, H, W), dtype=jnp.float32)
    target = jax.random.uniform(k2, (N, C, H, W), dtype=jnp.float32)

    loss = ssim_loss(pred, target)
    jax.block_until_ready(loss)

    ref = _ssim_loss_reference(pred, target)
    assert jnp.allclose(loss, ref, rtol=1e-5, atol=1e-5), (loss, ref)

    print("KERNEL_OK")
</pallas_src>

<mosaic_0001>
module attributes {stable_mosaic.version = 11 : i64} {
  func.func @_ssim_kernel(%arg0: i32, %arg1: memref<16x16xf32, #tpu.memory_space<vmem>>, %arg2: memref<128x128xf32, #tpu.memory_space<vmem>>, %arg3: memref<1x16x128xf32, #tpu.memory_space<vmem>>, %arg4: memref<1x16x128xf32, #tpu.memory_space<vmem>>, %arg5: memref<1x1x128xf32, #tpu.memory_space<vmem>>) attributes {dimension_semantics = [#tpu.dimension_semantics<parallel>], iteration_bounds = array<i64: 1>, scalar_prefetch = 0 : i64, scratch_operands = 0 : i64, tpu.core_type = #tpu.core_type<tc>, window_params = [{pipeline_mode = #tpu.pipeline_mode<synchronous>, transform_indices = @transform_0, window_bounds = array<i64: 16, 16>}, {pipeline_mode = #tpu.pipeline_mode<synchronous>, transform_indices = @transform_1, window_bounds = array<i64: 128, 128>}, {transform_indices = @transform_2, window_bounds = array<i64: 1, 16, 128>}, {transform_indices = @transform_3, window_bounds = array<i64: 1, 16, 128>}, {transform_indices = @transform_4, window_bounds = array<i64: 1, 1, 128>}]} {
    %c0 = arith.constant 0 : index
    %c0_0 = arith.constant 0 : index
    %c0_1 = arith.constant 0 : index
    %0 = vector.load %arg3[%c0, %c0_0, %c0_1] : memref<1x16x128xf32, #tpu.memory_space<vmem>>, vector<1x16x128xf32>
    %1 = vector.shape_cast %0 : vector<1x16x128xf32> to vector<16x128xf32>
    %c0_2 = arith.constant 0 : index
    %c0_3 = arith.constant 0 : index
    %c0_4 = arith.constant 0 : index
    %2 = vector.load %arg4[%c0_2, %c0_3, %c0_4] : memref<1x16x128xf32, #tpu.memory_space<vmem>>, vector<1x16x128xf32>
    %3 = vector.shape_cast %2 : vector<1x16x128xf32> to vector<16x128xf32>
    %c0_5 = arith.constant 0 : index
    %c0_6 = arith.constant 0 : index
    %4 = vector.load %arg1[%c0_5, %c0_6] : memref<16x16xf32, #tpu.memory_space<vmem>>, vector<16x16xf32>
    %c0_7 = arith.constant 0 : index
    %c0_8 = arith.constant 0 : index
    %5 = vector.load %arg2[%c0_7, %c0_8] : memref<128x128xf32, #tpu.memory_space<vmem>>, vector<128x128xf32>
    %cst = arith.constant dense<0.000000e+00> : vector<16x128xf32>
    %6 = tpu.matmul %4, %1, %cst {dimension_numbers = #tpu.dot_dimension_numbers<[1], [0], [0], [1], [0, 0, 1, 1], [], []>, precision = #tpu.contract_precision<fp32>} : vector<16x16xf32>, vector<16x128xf32>, vector<16x128xf32> -> vector<16x128xf32>
    %cst_9 = arith.constant dense<0.000000e+00> : vector<16x128xf32>
    %7 = tpu.matmul %6, %5, %cst_9 {dimension_numbers = #tpu.dot_dimension_numbers<[1], [0], [0], [1], [0, 0, 1, 1], [], []>, precision = #tpu.contract_precision<fp32>} : vector<16x128xf32>, vector<128x128xf32>, vector<16x128xf32> -> vector<16x128xf32>
    %cst_10 = arith.constant 0.00826446246 : f32
    %8 = vector.broadcast %cst_10 : f32 to vector<16x128xf32>
    %9 = arith.mulf %7, %8 : vector<16x128xf32>
    %cst_11 = arith.constant dense<0.000000e+00> : vector<16x128xf32>
    %10 = tpu.matmul %4, %3, %cst_11 {dimension_numbers = #tpu.dot_dimension_numbers<[1], [0], [0], [1], [0, 0, 1, 1], [], []>, precision = #tpu.contract_precision<fp32>} : vector<16x16xf32>, vector<16x128xf32>, vector<16x128xf32> -> vector<16x128xf32>
    %cst_12 = arith.constant dense<0.000000e+00> : vector<16x128xf32>
    %11 = tpu.matmul %10, %5, %cst_12 {dimension_numbers = #tpu.dot_dimension_numbers<[1], [0], [0], [1], [0, 0, 1, 1], [], []>, precision = #tpu.contract_precision<fp32>} : vector<16x128xf32>, vector<128x128xf32>, vector<16x128xf32> -> vector<16x128xf32>
    %cst_13 = arith.constant 0.00826446246 : f32
    %12 = vector.broadcast %cst_13 : f32 to vector<16x128xf32>
    %13 = arith.mulf %11, %12 : vector<16x128xf32>
    %14 = arith.addf %1, %3 : vector<16x128xf32>
    %15 = arith.subf %1, %3 : vector<16x128xf32>
    %16 = arith.mulf %14, %14 : vector<16x128xf32>
    %cst_14 = arith.constant dense<0.000000e+00> : vector<16x128xf32>
    %17 = tpu.matmul %4, %16, %cst_14 {dimension_numbers = #tpu.dot_dimension_numbers<[1], [0], [0], [1], [0, 0, 1, 1], [], []>, precision = #tpu.contract_precision<fp32>} : vector<16x16xf32>, vector<16x128xf32>, vector<16x128xf32> -> vector<16x128xf32>
    %cst_15 = arith.constant dense<0.000000e+00> : vector<16x128xf32>
    %18 = tpu.matmul %17, %5, %cst_15 {dimension_numbers = #tpu.dot_dimension_numbers<[1], [0], [0], [1], [0, 0, 1, 1], [], []>, precision = #tpu.contract_precision<fp32>} : vector<16x128xf32>, vector<128x128xf32>, vector<16x128xf32> -> vector<16x128xf32>
    %cst_16 = arith.constant 0.00826446246 : f32
    %19 = vector.broadcast %cst_16 : f32 to vector<16x128xf32>
    %20 = arith.mulf %18, %19 : vector<16x128xf32>
    %21 = arith.mulf %15, %15 : vector<16x128xf32>
    %cst_17 = arith.constant dense<0.000000e+00> : vector<16x128xf32>
    %22 = tpu.matmul %4, %21, %cst_17 {dimension_numbers = #tpu.dot_dimension_numbers<[1], [0], [0], [1], [0, 0, 1, 1], [], []>, precision = #tpu.contract_precision<fp32>} : vector<16x16xf32>, vector<16x128xf32>, vector<16x128xf32> -> vector<16x128xf32>
    %cst_18 = arith.constant dense<0.000000e+00> : vector<16x128xf32>
    %23 = tpu.matmul %22, %5, %cst_18 {dimension_numbers = #tpu.dot_dimension_numbers<[1], [0], [0], [1], [0, 0, 1, 1], [], []>, precision = #tpu.contract_precision<fp32>} : vector<16x128xf32>, vector<128x128xf32>, vector<16x128xf32> -> vector<16x128xf32>
    %cst_19 = arith.constant 0.00826446246 : f32
    %24 = vector.broadcast %cst_19 : f32 to vector<16x128xf32>
    %25 = arith.mulf %23, %24 : vector<16x128xf32>
    %26 = arith.mulf %9, %13 : vector<16x128xf32>
    %27 = arith.mulf %9, %9 : vector<16x128xf32>
    %28 = arith.mulf %13, %13 : vector<16x128xf32>
    %29 = arith.subf %20, %25 : vector<16x128xf32>
    %cst_20 = arith.constant 2.500000e-01 : f32
    %30 = vector.broadcast %cst_20 : f32 to vector<16x128xf32>
    %31 = arith.mulf %30, %29 : vector<16x128xf32>
    %32 = arith.subf %31, %26 : vector<16x128xf32>
    %33 = arith.addf %20, %25 : vector<16x128xf32>
    %cst_21 = arith.constant 5.000000e-01 : f32
    %34 = vector.broadcast %cst_21 : f32 to vector<16x128xf32>
    %35 = arith.mulf %34, %33 : vector<16x128xf32>
    %36 = arith.subf %35, %27 : vector<16x128xf32>
    %37 = arith.subf %36, %28 : vector<16x128xf32>
    %cst_22 = arith.constant 2.000000e+00 : f32
    %38 = vector.broadcast %cst_22 : f32 to vector<16x128xf32>
    %39 = arith.mulf %38, %26 : vector<16x128xf32>
    %cst_23 = arith.constant 9.99999974E-5 : f32
    %40 = vector.broadcast %cst_23 : f32 to vector<16x128xf32>
    %41 = arith.addf %39, %40 : vector<16x128xf32>
    %cst_24 = arith.constant 2.000000e+00 : f32
    %42 = vector.broadcast %cst_24 : f32 to vector<16x128xf32>
    %43 = arith.mulf %42, %32 : vector<16x128xf32>
    %cst_25 = arith.constant 8.99999984E-4 : f32
    %44 = vector.broadcast %cst_25 : f32 to vector<16x128xf32>
    %45 = arith.addf %43, %44 : vector<16x128xf32>
    %46 = arith.mulf %41, %45 : vector<16x128xf32>
    %47 = arith.addf %27, %28 : vector<16x128xf32>
    %cst_26 = arith.constant 9.99999974E-5 : f32
    %48 = vector.broadcast %cst_26 : f32 to vector<16x128xf32>
    %49 = arith.addf %47, %48 : vector<16x128xf32>
    %cst_27 = arith.constant 8.99999984E-4 : f32
    %50 = vector.broadcast %cst_27 : f32 to vector<16x128xf32>
    %51 = arith.addf %37, %50 : vector<16x128xf32>
    %52 = arith.mulf %49, %51 : vector<16x128xf32>
    %53 = tpu.reciprocal %52 {approx = true} : vector<16x128xf32> -> vector<16x128xf32>
    %54 = arith.mulf %52, %53 : vector<16x128xf32>
    %cst_28 = arith.constant 2.000000e+00 : f32
    %55 = vector.broadcast %cst_28 : f32 to vector<16x128xf32>
    %56 = arith.subf %55, %54 : vector<16x128xf32>
    %57 = arith.mulf %53, %56 : vector<16x128xf32>
    %58 = arith.mulf %46, %57 : vector<16x128xf32>
    %59 = vector.shape_cast %58 : vector<16x128xf32> to vector<1x16x128xf32>
    %cst_29 = arith.constant dense<0.000000e+00> : vector<1xf32>
    %60 = vector.multi_reduction <add>, %59, %cst_29 [1, 2] : vector<1x16x128xf32> to vector<1xf32>
    %61 = vector.shape_cast %60 : vector<1xf32> to vector<1x1x1xf32>
    %62 = vector.extract %61[0, 0, 0] : f32 from vector<1x1x1xf32>
    %63 = vector.broadcast %62 : f32 to vector<1x128xf32>
    %c0_30 = arith.constant 0 : index
    %c0_31 = arith.constant 0 : index
    %c0_32 = arith.constant 0 : index
    %64 = vector.load %arg5[%c0_30, %c0_31, %c0_32] : memref<1x1x128xf32, #tpu.memory_space<vmem>>, vector<1x1x128xf32>
    %65 = vector.shape_cast %64 : vector<1x1x128xf32> to vector<1x128xf32>
    %66 = vector.shape_cast %63 : vector<1x128xf32> to vector<1x1x128xf32>
    tpu.vector_store %arg5[%c0_30, %c0_31, %c0_32], %66 {strides = array<i32>} : memref<1x1x128xf32, #tpu.memory_space<vmem>>, vector<1x1x128xf32>,
    return
  }
  func.func @transform_0(%arg0: i32) -> (i32, i32) {
    %c0_i32 = arith.constant 0 : i32
    %c0_i32_0 = arith.constant 0 : i32
    %c0_i32_1 = arith.constant 0 : i32
    return %c0_i32, %c0_i32_0 : i32, i32
  }
  func.func @transform_1(%arg0: i32) -> (i32, i32) {
    %c0_i32 = arith.constant 0 : i32
    %c0_i32_0 = arith.constant 0 : i32
    %c0_i32_1 = arith.constant 0 : i32
    return %c0_i32, %c0_i32_0 : i32, i32
  }
  func.func @transform_2(%arg0: i32) -> (i32, i32, i32) {
    %c0_i32 = arith.constant 0 : i32
    %c0_i32_0 = arith.constant 0 : i32
    %c0_i32_1 = arith.constant 0 : i32
    return %arg0, %c0_i32, %c0_i32_0 : i32, i32, i32
  }
  func.func @transform_3(%arg0: i32) -> (i32, i32, i32) {
    %c0_i32 = arith.constant 0 : i32
    %c0_i32_0 = arith.constant 0 : i32
    %c0_i32_1 = arith.constant 0 : i32
    return %arg0, %c0_i32, %c0_i32_0 : i32, i32, i32
  }
  func.func @transform_4(%arg0: i32) -> (i32, i32, i32) {
    %c0_i32 = arith.constant 0 : i32
    %c0_i32_0 = arith.constant 0 : i32
    %c0_i32_1 = arith.constant 0 : i32
    return %arg0, %c0_i32, %c0_i32_0 : i32, i32, i32
  }
}

</mosaic_0001>

<bundles_post_ra>
// kernel: tpu_custom_call.1
= control target key start
LH: loop header
LB: loop body
LE: loop exit
PB: predicated region body
PF: predicated region fallthrough
CT: control target
= control target key end

     0   :  { %9 = vsyncpa [#allocation3], 0  ;;  %s7907_s0 = inlined_call_operand.hbm [shape: f32[16,16], index: 0, kind: input, shape index: {}]   ;;  %s7908_s1 = inlined_call_operand.hbm [shape: f32[128,128], index: 1, kind: input, shape index: {}]   ;;  %s7909_s2 = inlined_call_operand.hbm [shape: f32[1,16,128], index: 2, kind: input, shape index: {}]   ;;  %s7910_s3 = inlined_call_operand.hbm [shape: f32[1,16,128], index: 3, kind: input, shape index: {}]   ;;  %s7911_s4 = inlined_call_operand.hbm [shape: f32[1,1,128], index: 4, kind: output, shape index: {}]  }
   0x1   :  { %10 = vsyncpa [#allocation6], 0 }
   0x2   :  { %11 = vsyncpa [#allocation9], 0 }
   0x3   :  { %12 = vsyncpa [#allocation4], 0  ;;  %s6600_s15 = smov [#allocation5]   ;;  %s6601_s17 = smov [#allocation2]  }
   0x4   :  { %s30_s16 = sshll.u32 %s6600_s15, 4  ;;  %s18_s18 = sshll.u32 %s6601_s17, 4  ;;  %s31_s16 = int_to_ptr.vmem [resolvable:$true] %s30_s16  ;;  %s19_s18 = int_to_ptr.vmem [resolvable:$true] %s18_s18 }
   0x5   :  { %s6500_s19 = scalar_lea.vmem %s31_s16, 2048  ;;  %p6505_p1 = scmp.lt.s32.totalorder %s31_s16, %s31_s16 }
   0x6   :  { %p6501_p0 = scmp.ne.s32.totalorder %s31_s16, %s6500_s19  ;;  %p6506_p2 = scmp.lt.s32.totalorder %s6500_s19, %s6500_s19 }
   0x8   :  { %p6507_p3 = por %p6506_p2, %p6505_p1 }
   0xa   :  { %p6508_p4 = pnand %p6507_p3, %p6501_p0 }
   0xc   :  { %6511 = shalt.err (!%p6508_p4)
}
   0xd   :  { %s6602_s20 = smov 128   ;;  %s6603_s21 = smov 8  }
   0xe   :  { %36 = dma.hbm_to_vmem [thread:$0]  %s7908_s1, 2048, %s31_s16, [#allocation6], %s6602_s20, %s6602_s20, %s6603_s21  }
   0xf   :  { %s6520_s24 = scalar_lea.vmem %s19_s18, 256  ;;  %p6525_p6 = scmp.lt.s32.totalorder %s19_s18, %s19_s18 }
  0x10   :  { %p6521_p5 = scmp.ne.s32.totalorder %s19_s18, %s6520_s24  ;;  %p6526_p7 = scmp.lt.s32.totalorder %s6520_s24, %s6520_s24 }
  0x12   :  { %p6527_p8 = por %p6526_p7, %p6525_p6 }
  0x14   :  { %p6528_p9 = pnand %p6527_p8, %p6521_p5 }
  0x16   :  { %6531 = shalt.err (!%p6528_p9)
}
  0x17   :  { %24 = dma.hbm_to_vmem [thread:$0]  %s7907_s0, 256, %s19_s18, [#allocation3], %s6602_s20, %s6602_s20, %s6603_s21  }
  0x18   :  { %s6604_s27 = smov [#allocation7]   ;;  %s6605_s29 = smov [#allocation8]  }
  0x19   :  { %s42_s28 = sshll.u32 %s6604_s27, 4  ;;  %s54_s30 = sshll.u32 %s6605_s29, 4  ;;  %s43_s28 = int_to_ptr.vmem [resolvable:$true] %s42_s28  ;;  %s55_s30 = int_to_ptr.vmem [resolvable:$true] %s54_s30 }
  0x1a   :  { %s6540_s1 = scalar_lea.vmem %s43_s28, 256  ;;  %p6545_p11 = scmp.lt.s32.totalorder %s43_s28, %s43_s28 }
  0x1b   :  { %p6541_p10 = scmp.ne.s32.totalorder %s43_s28, %s6540_s1  ;;  %p6546_p12 = scmp.lt.s32.totalorder %s6540_s1, %s6540_s1 }
  0x1d   :  { %p6547_p13 = por %p6546_p12, %p6545_p11 }
  0x1f   :  { %p6548_p0 = pnand %p6547_p13, %p6541_p10 }
  0x21   :  { %6551 = shalt.err (!%p6548_p0)
}
  0x22   :  { %48 = dma.hbm_to_vmem [thread:$0]  %s7909_s2, 256, %s43_s28, [#allocation6], %s6602_s20, %s6602_s20, %s6603_s21  }
  0x23   :  { %s6560_s0 = scalar_lea.vmem %s55_s30, 256  ;;  %p6565_p2 = scmp.lt.s32.totalorder %s55_s30, %s55_s30 }
  0x24   :  { %p6561_p1 = scmp.ne.s32.totalorder %s55_s30, %s6560_s0  ;;  %p6566_p3 = scmp.lt.s32.totalorder %s6560_s0, %s6560_s0 }
  0x26   :  { %p6567_p4 = por %p6566_p3, %p6565_p2 }
  0x28   :  { %p6568_p5 = pnand %p6567_p4, %p6561_p1 }
  0x2a   :  { %6571 = shalt.err (!%p6568_p5)
}
  0x2b   :  { %60 = dma.hbm_to_vmem [thread:$0]  %s7910_s3, 256, %s55_s30, [#allocation9], %s6602_s20, %s6602_s20, %s6603_s21  }
  0x2c   :  { %6592 = dma.done.wait [#allocation3], 256  }
  0x2d   :  { %6593 = vsyncadd [#allocation3], 4294967040 }
  0x2e   :  { %6594 = dma.done.wait [#allocation6], 2304  }
  0x2f   :  { %6595 = vsyncadd [#allocation6], 4294964992 }
  0x30   :  { %6596 = dma.done.wait [#allocation9], 256  }
  0x31   :  { %6597 = vsyncadd [#allocation9], 4294967040  ;;  %vm95_vm0 = vcmask 130048   ;;  %v74_v0 = vld [vmem:[#allocation7 + $0x8] sm:$0xff]  ;;  %v73_v1 = vld [vmem:[#allocation7] sm:$0xff]  ;;  %s6606_s2 = smov [#allocation10]  }
  0x32   :  { %v77_v2 = vld [vmem:[#allocation2] sm:$0xff]  ;;  %v6656_v3 = vand.u32 4294901760, %v74_v0  ;;  %v6658_v4 = vand.u32 4294901760, %v73_v1  ;;  %v78_v6 = vld [vmem:[#allocation2 + $0x8] sm:$0xff]  ;;  %v92_v23 = vld [vmem:[#allocation5 + $0x68] sm:$0xff]  ;;  %s4928_s3 = sshll.u32 %s6606_s2, 4  ;;  %s4929_s3 = int_to_ptr.vmem [resolvable:$true] %s4928_s3 }
  0x33   :  { %v97_v5 = vsel %vm95_vm0, %v77_v2, 0  ;;  %v100_v8 = vsel %vm95_vm0, %v78_v6, 0  ;;  %v94_v12 = vld [vmem:[#allocation5 + $0x78] sm:$0xff]  ;;  %v93_v17 = vld [vmem:[#allocation5 + $0x70] sm:$0xff]  ;;  %v91_v29 = vld [vmem:[#allocation5 + $0x60] sm:$0xff]  ;;  %v6696_v32 = vand.u32 4294901760, %v92_v23  ;;  %p6577_p7 = scmp.lt.s32.totalorder %s4929_s3, %s4929_s3 }
  0x34   :  { %v6660_v7 = vand.u32 4294901760, %v97_v5  ;;  %5467 = vmatprep.subr.mxu0 %v6656_v3  ;;  %v219_v9 = vsub.f32 %v74_v0, %v6656_v3  ;;  %v6664_v10 = vand.u32 4294901760, %v100_v8  ;;  %v226_v11 = vsub.f32 %v73_v1, %v6658_v4  ;;  %v90_v34 = vld [vmem:[#allocation5 + $0x58] sm:$0xff]  ;;  %v89_v37 = vld [vmem:[#allocation5 + $0x50] sm:$0xff]  ;;  %v88_v41 = vld [vmem:[#allocation5 + $0x48] sm:$0xff]  ;;  %s6572_s10 = scalar_lea.vmem %s4929_s3, 16 }
  0x35   :  { %5468 = vmatpush3.msra.mxu0 %v6656_v3  ;;  %v6680_v19 = vand.u32 4294901760, %v94_v12  ;;  %v6687_v25 = vand.u32 4294901760, %v93_v17  ;;  %v6704_v36 = vand.u32 4294901760, %v91_v29  ;;  %v6711_v39 = vsub.f32 %v92_v23, %v6696_v32  ;;  %v87_v45 = vld [vmem:[#allocation5 + $0x40] sm:$0xff]  ;;  %p6573_p6 = scmp.ne.s32.totalorder %s4929_s3, %s6572_s10  ;;  %s6576_s11 = scalar_lea.vmem %s4929_s3, 32 }
  0x36   :  { %8046 = vst [vmem:[#allocation15_spill] sm:$0xff] %v6660_v7  ;;  %8047 = vst [vmem:[#allocation16_spill] sm:$0xff] %v6664_v10  ;;  %v6669_v13 = vsub.f32 %v97_v5, %v6660_v7  ;;  %5478 = vmatprep.mubr.f32.mxu1 %v6660_v7  ;;  %5469 = vmatprep.subr.mxu0 %v6658_v4  ;;  %v220_v14 = vand.u32 4294901760, %v219_v9  ;;  %v6674_v15 = vsub.f32 %v100_v8, %v6664_v10  ;;  %p6578_p8 = scmp.lt.s32.totalorder %s6576_s11, %s6572_s10 }
  0x37   :  { %v227_v16 = vand.u32 4294901760, %v226_v11  ;;  %5470 = vmatpush3.msra.mxu0 %v6658_v4  ;;  %v6694_v31 = vsub.f32 %v94_v12, %v6680_v19  ;;  %v6702_v35 = vsub.f32 %v93_v17, %v6687_v25  ;;  %v6713_v40 = vand.u32 4294901760, %v90_v34  ;;  %v86_v12 = vld [vmem:[#allocation5 + $0x38] sm:$0xff] }
  0x38   :  { %8048 = vst [vmem:[#allocation17_spill] sm:$0xff] %v6669_v13  ;;  %8049 = vst [vmem:[#allocation18_spill] sm:$0xff] %v6674_v15  ;;  %v6678_v18 = vand.u32 4294901760, %v6669_v13  ;;  %v221_v20 = vsub.f32 %v219_v9, %v220_v14  ;;  %v6683_v21 = vand.u32 4294901760, %v6674_v15  ;;  %5481 = vmatprep.subr.mxu0 %v219_v9  ;;  %v6721_v43 = vsub.f32 %v91_v29, %v6704_v36  ;;  %p6579_p9 = por %p6578_p8, %p6577_p7 }
  0x39   :  { %v228_v22 = vsub.f32 %v226_v11, %v227_v16  ;;  %v6708_v38 = vand.u32 4294901760, %v6694_v31  ;;  %v6718_v42 = vand.u32 4294901760, %v6702_v35  ;;  %v6723_v44 = vand.u32 4294901760, %v89_v37 }
  0x3a   :  { %8050 = vst [vmem:[#allocation19_spill] sm:$0xff] %v6678_v18  ;;  %8051 = vst [vmem:[#allocation20_spill] sm:$0xff] %v6683_v21  ;;  %v172_v24 = vsub.f32 %v6669_v13, %v6678_v18  ;;  %v222_v26 = vand.u32 4294901760, %v221_v20  ;;  %v182_v27 = vsub.f32 %v6674_v15, %v6683_v21  ;;  %v6732_v47 = vand.u32 4294901760, %v6711_v39  ;;  %p6580_p10 = pnand %p6579_p9, %p6573_p6 }
  0x3b   :  { %v229_v28 = vand.u32 4294901760, %v228_v22  ;;  %v709_v46 = vsub.f32 %v6694_v31, %v6708_v38  ;;  %v6735_v48 = vsub.f32 %v90_v34, %v6713_v40  ;;  %v6737_v49 = vand.u32 4294901760, %v88_v41  ;;  %v84_v22 = vld [vmem:[#allocation5 + $0x28] sm:$0xff] }
  0x3c   :  { %v6691_v30 = vand.u32 4294901760, %v172_v24  ;;  %5474 = vmatprep.subr.mxu1 %v222_v26  ;;  %v6698_v33 = vand.u32 4294901760, %v182_v27  ;;  %v716_v50 = vsub.f32 %v6702_v35, %v6718_v42  ;;  %v6744_v51 = vand.u32 4294901760, %v6721_v43  ;;  %v83_v27 = vld [vmem:[#allocation5 + $0x20] sm:$0xff] }
  0x3d   :  { %5475 = vmatpush3.msra.mxu1 %v222_v26  ;;  %v6747_v52 = vsub.f32 %v89_v37, %v6723_v44  ;;  %v6749_v53 = vand.u32 4294901760, %v87_v45  ;;  %v6753_v54 = vand.u32 4294901760, %v709_v46  ;;  %v723_v55 = vsub.f32 %v6711_v39, %v6732_v47 }
  0x3e   :  { %8052 = vst [vmem:[#allocation21_spill] sm:$0xff] %v6691_v30  ;;  %8053 = vst [vmem:[#allocation22_spill] sm:$0xff] %v6698_v33  ;;  %5471 = vmatprep.mubr.f32.mxu0 %v6691_v30  ;;  %5476 = vmatprep.subr.mxu1 %v229_v28  ;;  %v6758_v56 = vand.u32 4294901760, %v6735_v48  ;;  %v6761_v57 = vsub.f32 %v88_v41, %v6737_v49  ;;  %v6767_v58 = vand.u32 4294901760, %v716_v50  ;;  %v6853_v26 = vand.u32 4294901760, %v84_v22  ;;  %v82_v41 = vld [vmem:[#allocation5 + $0x18] sm:$0xff] }
  0x3f   :  { %5472 = vmatmul.mubr.f32.vlgmr.msra.gmra.mxu0 %v6698_v33  ;;  %5477 = vmatpush3.msra.mxu1 %v229_v28  ;;  %8054 = vst [vmem:[#allocation23_spill] sm:$0xff] %v6753_v54  ;;  %v730_v59 = vsub.f32 %v6721_v43, %v6744_v51  ;;  %v6772_v60 = vand.u32 4294901760, %v6747_v52  ;;  %v6775_v61 = vsub.f32 %v87_v45, %v6749_v53  ;;  %v6781_v62 = vand.u32 4294901760, %v723_v55 }
  0x40   :  { %5482 = vmatpush3.msra.mxu0 %v219_v9  ;;  %5479 = vmatmul.mubr.f32.vlgmr.msra.gmra.mxu1 %v6664_v10  ;;  %8055 = vst [vmem:[#allocation24_spill] sm:$0xff] %v6767_v58  ;;  %v737_v63 = vsub.f32 %v6735_v48, %v6758_v56  ;;  %v6786_v0 = vand.u32 4294901760, %v6761_v57  ;;  %v6863_v34 = vsub.f32 %v84_v22, %v6853_v26  ;;  %v6865_v37 = vand.u32 4294901760, %v83_v27  ;;  %v80_v22 = vld [vmem:[#allocation5 + $0x8] sm:$0xff] }
  0x41   :  { %5483 = vmatprep.subr.mxu0 %v226_v11  ;;  %5488 = vmatprep.subr.mxu1 %v6656_v3  ;;  %8056 = vst [vmem:[#allocation25_spill] sm:$0xff] %v6781_v62  ;;  %v6791_v1 = vand.u32 4294901760, %v730_v59  ;;  %v744_v2 = vsub.f32 %v6747_v52, %v6772_v60  ;;  %v6880_v59 = vand.u32 4294901760, %v82_v41 }
  0x42   :  { %5484 = vmatpush3.msra.mxu0 %v226_v11  ;;  %5485 = vmatprep.mubr.f32.mxu0 %v6669_v13  ;;  %8057 = vst [vmem:[#allocation26_spill] sm:$0xff] %v6786_v0  ;;  %v751_v5 = vsub.f32 %v6761_v57, %v6786_v0  ;;  %v6874_v50 = vand.u32 4294901760, %v6863_v34  ;;  %v6877_v55 = vsub.f32 %v83_v27, %v6865_v37 }
  0x43   :  { %5489 = vmatpush3.msra.mxu1 %v6656_v3  ;;  %5486 = vmatmul.mubr.f32.vlgmr.msra.gmra.mxu0 %v6674_v15  ;;  %8058 = vst [vmem:[#allocation27_spill] sm:$0xff] %v6791_v1  ;;  %v6810_v6 = vand.u32 4294901760, %v744_v2 }
  0x44   :  { %5490 = vmatprep.subr.mxu1 %v6658_v4  ;;  %5495 = vmatprep.subr.mxu0 %v220_v14  ;;  %v6818_v9 = vand.u32 4294901760, %v751_v5  ;;  %8067 = vst [vmem:[#allocation36_spill] sm:$0xff] %v6874_v50  ;;  %v779_v5 = vsub.f32 %v6863_v34, %v6874_v50 }
  0x45   :  { %5491 = vmatpush3.msra.mxu1 %v6658_v4  ;;  %5492 = vmatprep.mubr.f32.mxu1 %v6678_v18  ;;  %8061 = vst [vmem:[#allocation30_spill] sm:$0xff] %v6810_v6 }
  0x46   :  { %5496 = vmatpush3.msra.mxu0 %v220_v14  ;;  %5493 = vmatmul.mubr.f32.vlgmr.msra.gmra.mxu1 %v6683_v21  ;;  %8062 = vst [vmem:[#allocation31_spill] sm:$0xff] %v6818_v9  ;;  %v6838_v14 = vand.u32 4294901760, %v86_v12  ;;  %v6899_v27 = vand.u32 4294901760, %v779_v5 }
  0x47   :  { %5497 = vmatprep.subr.mxu0 %v227_v16  ;;  %5502 = vmatprep.subr.mxu1 %v6656_v3 }
  0x48   :  { %5498 = vmatpush3.msra.mxu0 %v227_v16  ;;  %5499 = vmatprep.mubr.f32.mxu0 %v6660_v7  ;;  %v85_v16 = vld [vmem:[#allocation5 + $0x30] sm:$0xff]  ;;  %v6841_v17 = vsub.f32 %v86_v12, %v6838_v14  ;;  %8070 = vst [vmem:[#allocation39_spill] sm:$0xff] %v6899_v27 }
  0x49   :  { %5503 = vmatpush3.msra.mxu1 %v6656_v3  ;;  %5500 = vmatmul.mubr.f32.vlgmr.msra.gmra.mxu0 %v6664_v10  ;;  %v6797_v3 = vand.u32 4294901760, %v6775_v61  ;;  %v6843_v20 = vand.u32 4294901760, %v85_v16 }
  0x4a   :  { %5504 = vmatprep.subr.mxu1 %v6658_v4  ;;  %5506 = vmatprep.mubr.f32.mxu1 %v6660_v7  ;;  %v6848_v23 = vand.u32 4294901760, %v6841_v17 }
  0x4b   :  { %5505 = vmatpush3.msra.mxu1 %v6658_v4  ;;  %5509 = vmatprep.subr.mxu0 %v6680_v19  ;;  %8059 = vst [vmem:[#allocation28_spill] sm:$0xff] %v6797_v3  ;;  %v6802_v4 = vand.u32 4294901760, %v737_v63  ;;  %v758_v8 = vsub.f32 %v6775_v61, %v6797_v3  ;;  %v6851_v24 = vsub.f32 %v85_v16, %v6843_v20  ;;  %v81_v63 = vld [vmem:[#allocation5 + $0x10] sm:$0xff] }
  0x4c   :  { %5507 = vmatmul.mubr.f32.vlgmr.msra.gmra.mxu1 %v6664_v10  ;;  %5544 = vmatprep.subr.mxu1 %v6753_v54  ;;  %8064 = vst [vmem:[#allocation33_spill] sm:$0xff] %v6848_v23  ;;  %v765_v28 = vsub.f32 %v6841_v17, %v6848_v23  ;;  %v6891_v12 = vand.u32 4294901760, %v81_v63  ;;  %v6895_v16 = vsub.f32 %v82_v41, %v6880_v59 }
  0x4d   :  { %5545 = vmatpush3.msra.mxu1 %v6753_v54  ;;  %5510 = vmatpush3.msra.mxu0 %v6680_v19  ;;  %8060 = vst [vmem:[#allocation29_spill] sm:$0xff] %v6802_v4  ;;  %v6824_v11 = vand.u32 4294901760, %v758_v8  ;;  %v6860_v29 = vand.u32 4294901760, %v6851_v24  ;;  %v6889_v8 = vand.u32 4294901760, %v6877_v55 }
  0x4e   :  { %5546 = vmatprep.subr.mxu1 %v6767_v58  ;;  %5511 = vmatprep.subr.mxu0 %v6687_v25  ;;  %v6869_v45 = vand.u32 4294901760, %v765_v28  ;;  %v6911_v41 = vand.u32 4294901760, %v6895_v16 }
  0x4f   :  { %5547 = vmatpush3.msra.mxu1 %v6767_v58  ;;  %5512 = vmatpush3.msra.mxu0 %v6687_v25  ;;  %8063 = vst [vmem:[#allocation32_spill] sm:$0xff] %v6824_v11  ;;  %8065 = vst [vmem:[#allocation34_spill] sm:$0xff] %v6860_v29  ;;  %v772_v46 = vsub.f32 %v6851_v24, %v6860_v29  ;;  %v786_v28 = vsub.f32 %v6877_v55, %v6889_v8 }
  0x50   :  { %5548 = vmatprep.subr.mxu1 %v6781_v62  ;;  %5513 = vmatprep.subr.mxu0 %v6696_v32  ;;  %8066 = vst [vmem:[#allocation35_spill] sm:$0xff] %v6869_v45  ;;  %8069 = vst [vmem:[#allocation38_spill] sm:$0xff] %v6889_v8 }
  0x51   :  { %5549 = vmatpush3.msra.mxu1 %v6781_v62  ;;  %5514 = vmatpush3.msra.mxu0 %v6696_v32  ;;  %v6884_v2 = vand.u32 4294901760, %v772_v46  ;;  %v6904_v46 = vsub.f32 %v81_v63, %v6891_v12  ;;  %8071 = vst [vmem:[#allocation40_spill] sm:$0xff] %v6911_v41  ;;  %v6915_v5 = vand.u32 4294901760, %v786_v28 }
  0x52   :  { %5550 = vmatprep.subr.mxu1 %v6791_v1  ;;  %5515 = vmatprep.subr.mxu0 %v6704_v36 }
  0x53   :  { %5551 = vmatpush3.msra.mxu1 %v6791_v1  ;;  %5516 = vmatpush3.msra.mxu0 %v6704_v36  ;;  %8068 = vst [vmem:[#allocation37_spill] sm:$0xff] %v6884_v2  ;;  %8072 = vst [vmem:[#allocation41_spill] sm:$0xff] %v6915_v5 }
  0x54   :  { %5552 = vmatprep.subr.mxu1 %v6802_v4  ;;  %5517 = vmatprep.subr.mxu0 %v6713_v40 }
  0x55   :  { %5553 = vmatpush3.msra.mxu1 %v6802_v4  ;;  %5518 = vmatpush3.msra.mxu0 %v6713_v40 }
  0x56   :  { %5554 = vmatprep.subr.mxu1 %v6810_v6  ;;  %5519 = vmatprep.subr.mxu0 %v6723_v44 }
  0x57   :  { %5555 = vmatpush3.msra.mxu1 %v6810_v6  ;;  %5520 = vmatpush3.msra.mxu0 %v6723_v44 }
  0x58   :  { %5556 = vmatprep.subr.mxu1 %v6818_v9  ;;  %5521 = vmatprep.subr.mxu0 %v6737_v49 }
  0x59   :  { %5557 = vmatpush3.msra.mxu1 %v6818_v9  ;;  %5522 = vmatpush3.msra.mxu0 %v6737_v49  ;;  %v6918_v9 = vand.u32 4294901760, %v6904_v46 }
  0x5a   :  { %5558 = vmatprep.subr.mxu1 %v6824_v11  ;;  %5523 = vmatprep.subr.mxu0 %v6749_v53 }
  0x5b   :  { %5559 = vmatpush3.msra.mxu1 %v6824_v11  ;;  %5524 = vmatpush3.msra.mxu0 %v6749_v53  ;;  %v6906_v11 = vand.u32 4294901760, %v80_v22  ;;  %8073 = vst [vmem:[#allocation42_spill] sm:$0xff] %v6918_v9  ;;  %v800_v28 = vsub.f32 %v6904_v46, %v6918_v9 }
  0x5c   :  { %5525 = vmatprep.subr.mxu0 %v6838_v14  ;;  %5560 = vmatprep.subr.mxu1 %v6869_v45 }
  0x5d   :  { %5526 = vmatpush3.msra.mxu0 %v6838_v14  ;;  %5561 = vmatpush3.msra.mxu1 %v6869_v45  ;;  %v79_v45 = vld [vmem:[#allocation5] sm:$0xff]  ;;  %v6921_v63 = vsub.f32 %v80_v22, %v6906_v11  ;;  %v6944_v1 = vand.u32 4294901760, %v800_v28 }
  0x5e   :  { %5527 = vmatprep.subr.mxu0 %v6843_v20  ;;  %5562 = vmatprep.subr.mxu1 %v6884_v2  ;;  %v6923_v6 = vand.u32 4294901760, %v79_v45 }
  0x5f   :  { %5528 = vmatpush3.msra.mxu0 %v6843_v20  ;;  %5563 = vmatpush3.msra.mxu1 %v6884_v2  ;;  %v793_v2 = vsub.f32 %v6895_v16, %v6911_v41  ;;  %v6934_v4 = vand.u32 4294901760, %v6921_v63  ;;  %8076 = vst [vmem:[#allocation45_spill] sm:$0xff] %v6944_v1 }
  0x60   :  { %5529 = vmatprep.subr.mxu0 %v6853_v26  ;;  %5564 = vmatprep.subr.mxu1 %v6899_v27  ;;  %v6937_v22 = vsub.f32 %v79_v45, %v6923_v6 }
  0x61   :  { %5530 = vmatpush3.msra.mxu0 %v6853_v26  ;;  %5565 = vmatpush3.msra.mxu1 %v6899_v27  ;;  %8074 = vst [vmem:[#allocation43_spill] sm:$0xff] %v6934_v4  ;;  %v6941_v27 = vand.u32 4294901760, %v793_v2  ;;  %v807_v62 = vsub.f32 %v6921_v63, %v6934_v4 }
  0x62   :  { %5531 = vmatprep.subr.mxu0 %v6865_v37  ;;  %5566 = vmatprep.subr.mxu1 %v6915_v5  ;;  %v6949_v58 = vand.u32 4294901760, %v6937_v22 }
  0x63   :  { %5532 = vmatpush3.msra.mxu0 %v6865_v37  ;;  %5567 = vmatpush3.msra.mxu1 %v6915_v5  ;;  %8075 = vst [vmem:[#allocation44_spill] sm:$0xff] %v6941_v27  ;;  %v6955_v45 = vand.u32 4294901760, %v807_v62 }
  0x64   :  { %5533 = vmatprep.subr.mxu0 %v6880_v59  ;;  %8077 = vst [vmem:[#allocation46_spill] sm:$0xff] %v6949_v58  ;;  %5568 = vmatprep.subr.mxu1 %v6941_v27  ;;  %v814_v2 = vsub.f32 %v6937_v22, %v6949_v58 }
  0x65   :  { %5534 = vmatpush3.msra.mxu0 %v6880_v59  ;;  %5569 = vmatpush3.msra.mxu1 %v6941_v27  ;;  %8078 = vst [vmem:[#allocation47_spill] sm:$0xff] %v6955_v45 }
  0x66   :  { %5535 = vmatprep.subr.mxu0 %v6891_v12  ;;  %5570 = vmatprep.subr.mxu1 %v6944_v1  ;;  %v6961_v28 = vand.u32 4294901760, %v814_v2 }
  0x67   :  { %5536 = vmatpush3.msra.mxu0 %v6891_v12  ;;  %5571 = vmatpush3.msra.mxu1 %v6944_v1 }
  0x68   :  { %5537 = vmatprep.subr.mxu0 %v6906_v11  ;;  %8079 = vst [vmem:[#allocation48_spill] sm:$0xff] %v6961_v28  ;;  %5572 = vmatprep.subr.mxu1 %v6955_v45 }
  0x69   :  { %5538 = vmatpush3.msra.mxu0 %v6906_v11  ;;  %5573 = vmatpush3.msra.mxu1 %v6955_v45 }
  0x6a   :  { %5539 = vmatprep.subr.mxu0 %v6923_v6  ;;  %5574 = vmatprep.subr.mxu1 %v6961_v28 }
  0x6b   :  { %5540 = vmatpush3.msra.mxu0 %v6923_v6  ;;  %5575 = vmatpush3.msra.mxu1 %v6961_v28 }
  0x6c   :  { %5579 = vmatprep.subr.mxu0 %v6694_v31  ;;  %5614 = vmatprep.subr.mxu1 %v6680_v19 }
  0xff   :  { %v5473_v62 = vpop.f32.mrf.mxu0 }
 0x100   :  { %v5480_v5 = vpop.f32.mrf.mxu1 }
 0x101   :  { %v175_v27 = vpop.f32.mrf.mxu0  ;;  %v273_v54 = vadd.f32 %v5480_v5, %v5473_v62  ;;  %v8080_v62 = vld [vmem:[#allocation36_spill] sm:$0xff] }
 0x102   :  { %v266_v21 = vpop.f32.mrf.mxu1 }
 0x103   :  { %v267_v15 = vadd.f32 %v266_v21, %v175_v27  ;;  %v5487_v18 = vpop.f32.mrf.mxu0 }
 0x104   :  { %v356_v1 = vadd.f32 %v5487_v18, %v273_v54 }
 0x105   :  { %v348_v2 = vpop.f32.mrf.mxu0 }
 0x106   :  { %v349_v13 = vadd.f32 %v348_v2, %v267_v15  ;;  %v5494_v33 = vpop.f32.mrf.mxu1 }
 0x107   :  { %v439_v30 = vadd.f32 %v5494_v33, %v356_v1  ;;  %v7070_v1 = vld [vmem:[#allocation8] sm:$0xff] }
 0x108   :  { %v430_v10 = vpop.f32.mrf.mxu1 }
 0x109   :  { %v431_v45 = vadd.f32 %v430_v10, %v349_v13  ;;  %v5501_v7 = vpop.f32.mrf.mxu0 }
 0x10a   :  { %v522_v58 = vadd.f32 %v5501_v7, %v439_v30 }
 0x10b   :  { %v515_v4 = vpop.f32.mrf.mxu0 }
 0x10c   :  { %v5508_v28 = vpop.f32.mrf.mxu1  ;;  %v516_v9 = vadd.f32 %v515_v4, %v431_v45 }
 0x10d   :  { %v601_v41 = vadd.f32 %v5508_v28, %v522_v58  ;;  %v7064_v58 = vld [vmem:[#allocation8 + $0x8] sm:$0xff] }
 0x10e   :  { %v594_v8 = vpop.f32.mrf.mxu1  ;;  %v7075_v4 = vand.u32 4294901760, %v7064_v58 }
 0x10f   :  { %v6968_v50 = vand.u32 4294901760, %v601_v41  ;;  %v595_v5 = vadd.f32 %v594_v8, %v516_v9  ;;  %v7082_v9 = vand.u32 4294901760, %v7070_v1 }
 0x110   :  { %v1407_v8 = vsub.f32 %v7064_v58, %v7075_v4 }
 0x111   :  { %v6971_v21 = vsub.f32 %v601_v41, %v6968_v50  ;;  %v6973_v18 = vand.u32 4294901760, %v595_v5  ;;  %v1414_v27 = vsub.f32 %v7070_v1, %v7082_v9 }
 0x112   :  { %v1408_v41 = vand.u32 4294901760, %v1407_v8 }
 0x113   :  { %v697_v15 = vand.u32 4294901760, %v6971_v21  ;;  %v686_v33 = vsub.f32 %v595_v5, %v6973_v18  ;;  %5576 = vmatprep.mubr.f32.mxu1 %v6973_v18  ;;  %v1415_v45 = vand.u32 4294901760, %v1414_v27  ;;  %v8081_v5 = vld [vmem:[#allocation38_spill] sm:$0xff] }
 0x114   :  { %5577 = vmatmul.mubr.f32.vlgmr.msra.gmra.mxu1 %v6968_v50  ;;  %v1409_v28 = vsub.f32 %v1407_v8, %v1408_v41 }
 0x115   :  { %5615 = vmatpush3.msra.mxu1 %v6680_v19  ;;  %v687_v7 = vand.u32 4294901760, %v686_v33  ;;  %v698_v10 = vsub.f32 %v6971_v21, %v697_v15  ;;  %v1416_v2 = vsub.f32 %v1414_v27, %v1415_v45 }
 0x116   :  { %5616 = vmatprep.subr.mxu1 %v6687_v25 }
 0x117   :  { %5617 = vmatpush3.msra.mxu1 %v6687_v25  ;;  %5646 = vmatprep.mubr.f32.mxu1 %v687_v7  ;;  %v688_v13 = vsub.f32 %v686_v33, %v687_v7  ;;  %v699_v54 = vand.u32 4294901760, %v698_v10  ;;  %v8084_v7 = vld [vmem:[#allocation43_spill] sm:$0xff]  ;;  %v8085_v10 = vld [vmem:[#allocation46_spill] sm:$0xff] }
 0x118   :  { %5618 = vmatprep.subr.mxu1 %v6696_v32 }
 0x119   :  { %5619 = vmatpush3.msra.mxu1 %v6696_v32  ;;  %v689_v30 = vand.u32 4294901760, %v688_v13  ;;  %v8086_v13 = vld [vmem:[#allocation15_spill] sm:$0xff] }
 0x11a   :  { %5620 = vmatprep.subr.mxu1 %v6704_v36 }
 0x11b   :  { %5621 = vmatpush3.msra.mxu1 %v6704_v36  ;;  %5541 = vmatprep.mubr.f32.mxu0 %v689_v30  ;;  %v8087_v30 = vld [vmem:[#allocation16_spill] sm:$0xff] }
 0x11c   :  { %5622 = vmatprep.subr.mxu1 %v6713_v40  ;;  %5542 = vmatmul.mubr.f32.vlgmr.msra.gmra.mxu0 %v699_v54  ;;  %v8088_v54 = vld [vmem:[#allocation21_spill] sm:$0xff] }
 0x11d   :  { %5580 = vmatpush3.msra.mxu0 %v6694_v31  ;;  %5623 = vmatpush3.msra.mxu1 %v6713_v40 }
 0x11e   :  { %5581 = vmatprep.subr.mxu0 %v6702_v35  ;;  %5611 = vmatprep.mubr.f32.mxu0 %v686_v33  ;;  %v8083_v33 = vld [vmem:[#allocation42_spill] sm:$0xff] }
 0x11f   :  { %5624 = vmatprep.subr.mxu1 %v6723_v44  ;;  %5582 = vmatpush3.msra.mxu0 %v6702_v35 }
 0x120   :  { %5625 = vmatpush3.msra.mxu1 %v6723_v44  ;;  %5583 = vmatprep.subr.mxu0 %v6711_v39 }
 0x121   :  { %5626 = vmatprep.subr.mxu1 %v6737_v49  ;;  %5584 = vmatpush3.msra.mxu0 %v6711_v39 }
 0x122   :  { %5627 = vmatpush3.msra.mxu1 %v6737_v49  ;;  %5585 = vmatprep.subr.mxu0 %v6721_v43 }
 0x123   :  { %5628 = vmatprep.subr.mxu1 %v6749_v53  ;;  %5586 = vmatpush3.msra.mxu0 %v6721_v43 }
 0x124   :  { %5629 = vmatpush3.msra.mxu1 %v6749_v53  ;;  %5587 = vmatprep.subr.mxu0 %v6735_v48 }
 0x125   :  { %5630 = vmatprep.subr.mxu1 %v6838_v14  ;;  %5588 = vmatpush3.msra.mxu0 %v6735_v48 }
 0x126   :  { %5631 = vmatpush3.msra.mxu1 %v6838_v14  ;;  %5589 = vmatprep.subr.mxu0 %v6747_v52 }
 0x127   :  { %5632 = vmatprep.subr.mxu1 %v6843_v20  ;;  %5590 = vmatpush3.msra.mxu0 %v6747_v52 }
 0x128   :  { %5633 = vmatpush3.msra.mxu1 %v6843_v20  ;;  %5591 = vmatprep.subr.mxu0 %v6761_v57 }
 0x129   :  { %5634 = vmatprep.subr.mxu1 %v6853_v26  ;;  %5592 = vmatpush3.msra.mxu0 %v6761_v57 }
 0x12a   :  { %5635 = vmatpush3.msra.mxu1 %v6853_v26  ;;  %5593 = vmatprep.subr.mxu0 %v6775_v61 }
 0x12b   :  { %5636 = vmatprep.subr.mxu1 %v6865_v37  ;;  %5594 = vmatpush3.msra.mxu0 %v6775_v61 }
 0x12c   :  { %5637 = vmatpush3.msra.mxu1 %v6865_v37  ;;  %5595 = vmatprep.subr.mxu0 %v6841_v17 }
 0x12d   :  { %5638 = vmatprep.subr.mxu1 %v6880_v59  ;;  %5596 = vmatpush3.msra.mxu0 %v6841_v17 }
 0x12e   :  { %5639 = vmatpush3.msra.mxu1 %v6880_v59  ;;  %5597 = vmatprep.subr.mxu0 %v6851_v24 }
 0x12f   :  { %5640 = vmatprep.subr.mxu1 %v6891_v12  ;;  %5598 = vmatpush3.msra.mxu0 %v6851_v24 }
 0x130   :  { %5641 = vmatpush3.msra.mxu1 %v6891_v12  ;;  %5599 = vmatprep.subr.mxu0 %v6863_v34 }
 0x131   :  { %5642 = vmatprep.subr.mxu1 %v6906_v11  ;;  %5600 = vmatpush3.msra.mxu0 %v6863_v34 }
 0x132   :  { %5643 = vmatpush3.msra.mxu1 %v6906_v11  ;;  %5601 = vmatprep.subr.mxu0 %v6877_v55 }
 0x133   :  { %5644 = vmatprep.subr.mxu1 %v6923_v6  ;;  %5602 = vmatpush3.msra.mxu0 %v6877_v55 }
 0x134   :  { %5645 = vmatpush3.msra.mxu1 %v6923_v6  ;;  %5603 = vmatprep.subr.mxu0 %v6895_v16 }
 0x135   :  { %5647 = vmatmul.mubr.f32.vlgmr.msra.gmra.mxu1 %v697_v15  ;;  %5684 = vmatprep.subr.mxu1 %v6680_v19  ;;  %v1417_v15 = vand.u32 4294901760, %v1416_v2  ;;  %v8091_v2 = vld [vmem:[#allocation19_spill] sm:$0xff] }
 0x136   :  { %5604 = vmatpush3.msra.mxu0 %v6895_v16  ;;  %5685 = vmatpush3.msra.mxu1 %v6680_v19 }
 0x137   :  { %5716 = vmatprep.mubr.f32.mxu1 %v6973_v18  ;;  %5605 = vmatprep.subr.mxu0 %v6904_v46 }
 0x138   :  { %5686 = vmatprep.subr.mxu1 %v6687_v25  ;;  %5606 = vmatpush3.msra.mxu0 %v6904_v46 }
 0x139   :  { %5687 = vmatpush3.msra.mxu1 %v6687_v25  ;;  %5607 = vmatprep.subr.mxu0 %v6921_v63 }
 0x13a   :  { %5688 = vmatprep.subr.mxu1 %v6696_v32  ;;  %5608 = vmatpush3.msra.mxu0 %v6921_v63 }
 0x13b   :  { %5689 = vmatpush3.msra.mxu1 %v6696_v32  ;;  %5609 = vmatprep.subr.mxu0 %v6937_v22 }
 0x13c   :  { %5690 = vmatprep.subr.mxu1 %v6704_v36  ;;  %5610 = vmatpush3.msra.mxu0 %v6937_v22 }
 0x13d   :  { %5691 = vmatpush3.msra.mxu1 %v6704_v36  ;;  %5612 = vmatmul.mubr.f32.vlgmr.msra.gmra.mxu0 %v6971_v21  ;;  %v1410_v21 = vand.u32 4294901760, %v1409_v28  ;;  %v8089_v28 = vld [vmem:[#allocation22_spill] sm:$0xff] }
 0x13e   :  { %5649 = vmatprep.subr.mxu0 %v6708_v38  ;;  %5692 = vmatprep.subr.mxu1 %v6713_v40 }
 0x13f   :  { %5650 = vmatpush3.msra.mxu0 %v6708_v38  ;;  %5681 = vmatprep.mubr.f32.mxu0 %v6973_v18  ;;  %v8082_v18 = vld [vmem:[#allocation40_spill] sm:$0xff] }
 0x140   :  { %5693 = vmatpush3.msra.mxu1 %v6713_v40  ;;  %5651 = vmatprep.subr.mxu0 %v6718_v42 }
 0x141   :  { %5694 = vmatprep.subr.mxu1 %v6723_v44  ;;  %5652 = vmatpush3.msra.mxu0 %v6718_v42 }
 0x142   :  { %5695 = vmatpush3.msra.mxu1 %v6723_v44  ;;  %5653 = vmatprep.subr.mxu0 %v6732_v47 }
 0x143   :  { %5696 = vmatprep.subr.mxu1 %v6737_v49  ;;  %5654 = vmatpush3.msra.mxu0 %v6732_v47 }
 0x144   :  { %5697 = vmatpush3.msra.mxu1 %v6737_v49  ;;  %5655 = vmatprep.subr.mxu0 %v6744_v51 }
 0x145   :  { %5698 = vmatprep.subr.mxu1 %v6749_v53  ;;  %5656 = vmatpush3.msra.mxu0 %v6744_v51 }
 0x146   :  { %5699 = vmatpush3.msra.mxu1 %v6749_v53  ;;  %5657 = vmatprep.subr.mxu0 %v6758_v56 }
 0x147   :  { %5700 = vmatprep.subr.mxu1 %v6838_v14  ;;  %5658 = vmatpush3.msra.mxu0 %v6758_v56 }
 0x148   :  { %5701 = vmatpush3.msra.mxu1 %v6838_v14  ;;  %5659 = vmatprep.subr.mxu0 %v6772_v60 }
 0x149   :  { %5702 = vmatprep.subr.mxu1 %v6843_v20  ;;  %5660 = vmatpush3.msra.mxu0 %v6772_v60 }
 0x14a   :  { %5703 = vmatpush3.msra.mxu1 %v6843_v20  ;;  %5661 = vmatprep.subr.mxu0 %v6786_v0 }
 0x14b   :  { %5704 = vmatprep.subr.mxu1 %v6853_v26  ;;  %5662 = vmatpush3.msra.mxu0 %v6786_v0 }
 0x14c   :  { %5705 = vmatpush3.msra.mxu1 %v6853_v26  ;;  %5663 = vmatprep.subr.mxu0 %v6797_v3 }
 0x14d   :  { %5706 = vmatprep.subr.mxu1 %v6865_v37  ;;  %5664 = vmatpush3.msra.mxu0 %v6797_v3 }
 0x14e   :  { %5707 = vmatpush3.msra.mxu1 %v6865_v37  ;;  %5665 = vmatprep.subr.mxu0 %v6848_v23 }
 0x14f   :  { %5708 = vmatprep.subr.mxu1 %v6880_v59  ;;  %5666 = vmatpush3.msra.mxu0 %v6848_v23 }
 0x150   :  { %5709 = vmatpush3.msra.mxu1 %v6880_v59  ;;  %5667 = vmatprep.subr.mxu0 %v6860_v29 }
 0x151   :  { %5710 = vmatprep.subr.mxu1 %v6891_v12  ;;  %5668 = vmatpush3.msra.mxu0 %v6860_v29 }
 0x152   :  { %5711 = vmatpush3.msra.mxu1 %v6891_v12  ;;  %5669 = vmatprep.subr.mxu0 %v8080_v62 }
 0x153   :  { %5712 = vmatprep.subr.mxu1 %v6906_v11  ;;  %5670 = vmatpush3.msra.mxu0 %v8080_v62 }
 0x154   :  { %5713 = vmatpush3.msra.mxu1 %v6906_v11  ;;  %5671 = vmatprep.subr.mxu0 %v8081_v5 }
 0x155   :  { %5714 = vmatprep.subr.mxu1 %v6923_v6  ;;  %5672 = vmatpush3.msra.mxu0 %v8081_v5 }
 0x156   :  { %5715 = vmatpush3.msra.mxu1 %v6923_v6  ;;  %5673 = vmatprep.subr.mxu0 %v8082_v18 }
 0x157   :  { %5717 = vmatmul.mubr.f32.vlgmr.msra.gmra.mxu1 %v6968_v50  ;;  %5674 = vmatpush3.msra.mxu0 %v8082_v18 }
 0x158   :  { %5675 = vmatprep.subr.mxu0 %v8083_v33  ;;  %5726 = vmatprep.subr.mxu1 %v1410_v21 }
 0x159   :  { %5676 = vmatpush3.msra.mxu0 %v8083_v33  ;;  %5727 = vmatpush3.msra.mxu1 %v1410_v21  ;;  %v8092_v21 = vld [vmem:[#allocation18_spill] sm:$0xff] }
 0x15a   :  { %5677 = vmatprep.subr.mxu0 %v8084_v7  ;;  %5728 = vmatprep.subr.mxu1 %v1417_v15 }
 0x15b   :  { %5678 = vmatpush3.msra.mxu0 %v8084_v7  ;;  %5729 = vmatpush3.msra.mxu1 %v1417_v15  ;;  %v8093_v15 = vld [vmem:[#allocation20_spill] sm:$0xff] }
 0x15c   :  { %5679 = vmatprep.subr.mxu0 %v8085_v10  ;;  %5730 = vmatprep.mubr.f32.mxu1 %v8086_v13 }
 0x15d   :  { %5680 = vmatpush3.msra.mxu0 %v8085_v10  ;;  %5731 = vmatmul.mubr.f32.vlgmr.msra.gmra.mxu1 %v8087_v30 }
 0x15e   :  { %5682 = vmatmul.mubr.f32.vlgmr.msra.gmra.mxu0 %v6968_v50  ;;  %5719 = vmatprep.subr.mxu0 %v7075_v4  ;;  %v8090_v50 = vld [vmem:[#allocation17_spill] sm:$0xff] }
 0x15f   :  { %5720 = vmatpush3.msra.mxu0 %v7075_v4  ;;  %5723 = vmatprep.mubr.f32.mxu0 %v8088_v54 }
 0x160   :  { %5721 = vmatprep.subr.mxu0 %v7082_v9  ;;  %5740 = vmatprep.subr.mxu1 %v7075_v4 }
 0x161   :  { %5722 = vmatpush3.msra.mxu0 %v7082_v9  ;;  %5741 = vmatpush3.msra.mxu1 %v7075_v4 }
 0x162   :  { %5724 = vmatmul.mubr.f32.vlgmr.msra.gmra.mxu0 %v8089_v28  ;;  %5733 = vmatprep.subr.mxu0 %v1407_v8 }
 0x163   :  { %5734 = vmatpush3.msra.mxu0 %v1407_v8  ;;  %5742 = vmatprep.subr.mxu1 %v7082_v9  ;;  %v8094_v8 = vld [vmem:[#allocation23_spill] sm:$0xff] }
 0x164   :  { %5735 = vmatprep.subr.mxu0 %v1414_v27  ;;  %5737 = vmatprep.mubr.f32.mxu0 %v8090_v50 }
 0x165   :  { %5736 = vmatpush3.msra.mxu0 %v1414_v27  ;;  %5743 = vmatpush3.msra.mxu1 %v7082_v9  ;;  %v8097_v27 = vld [vmem:[#allocation27_spill] sm:$0xff] }
 0x166   :  { %5744 = vmatprep.mubr.f32.mxu1 %v8091_v2  ;;  %5738 = vmatmul.mubr.f32.vlgmr.msra.gmra.mxu0 %v8092_v21 }
 0x167   :  { %5745 = vmatmul.mubr.f32.vlgmr.msra.gmra.mxu1 %v8093_v15  ;;  %5747 = vmatprep.subr.mxu0 %v1408_v41 }
 0x168   :  { %5754 = vmatprep.subr.mxu1 %v7075_v4  ;;  %5748 = vmatpush3.msra.mxu0 %v1408_v41  ;;  %v8098_v41 = vld [vmem:[#allocation29_spill] sm:$0xff] }
 0x169   :  { %5755 = vmatpush3.msra.mxu1 %v7075_v4  ;;  %5749 = vmatprep.subr.mxu0 %v1415_v45  ;;  %v8095_v4 = vld [vmem:[#allocation24_spill] sm:$0xff] }
 0x16a   :  { %5756 = vmatprep.subr.mxu1 %v7082_v9  ;;  %5750 = vmatpush3.msra.mxu0 %v1415_v45  ;;  %v8099_v45 = vld [vmem:[#allocation30_spill] sm:$0xff] }
 0x16b   :  { %5751 = vmatprep.mubr.f32.mxu0 %v8086_v13  ;;  %5757 = vmatpush3.msra.mxu1 %v7082_v9  ;;  %v8096_v9 = vld [vmem:[#allocation25_spill] sm:$0xff] }
 0x16c   :  { %5758 = vmatprep.mubr.f32.mxu1 %v8086_v13  ;;  %5752 = vmatmul.mubr.f32.vlgmr.msra.gmra.mxu0 %v8087_v30 }
 0x16d   :  { %5759 = vmatmul.mubr.f32.vlgmr.msra.gmra.mxu1 %v8087_v30  ;;  %5796 = vmatprep.subr.mxu1 %v8094_v8 }
 0x16e   :  { %5797 = vmatpush3.msra.mxu1 %v8094_v8  ;;  %5761 = vmatprep.subr.mxu0 %v6680_v19 }
 0x16f   :  { %5798 = vmatprep.subr.mxu1 %v8095_v4  ;;  %5762 = vmatpush3.msra.mxu0 %v6680_v19 }
 0x170   :  { %5799 = vmatpush3.msra.mxu1 %v8095_v4  ;;  %5763 = vmatprep.subr.mxu0 %v6687_v25 }
 0x171   :  { %5800 = vmatprep.subr.mxu1 %v8096_v9  ;;  %5764 = vmatpush3.msra.mxu0 %v6687_v25 }
 0x172   :  { %5801 = vmatpush3.msra.mxu1 %v8096_v9  ;;  %5765 = vmatprep.subr.mxu0 %v6696_v32  ;;  %v8100_v9 = vld [vmem:[#allocation31_spill] sm:$0xff] }
 0x173   :  { %5802 = vmatprep.subr.mxu1 %v8097_v27  ;;  %5766 = vmatpush3.msra.mxu0 %v6696_v32 }
 0x174   :  { %5803 = vmatpush3.msra.mxu1 %v8097_v27  ;;  %5767 = vmatprep.subr.mxu0 %v6704_v36  ;;  %v8101_v27 = vld [vmem:[#allocation32_spill] sm:$0xff] }
 0x175   :  { %5804 = vmatprep.subr.mxu1 %v8098_v41  ;;  %5768 = vmatpush3.msra.mxu0 %v6704_v36 }
 0x176   :  { %5805 = vmatpush3.msra.mxu1 %v8098_v41  ;;  %5769 = vmatprep.subr.mxu0 %v6713_v40  ;;  %v8102_v41 = vld [vmem:[#allocation35_spill] sm:$0xff] }
 0x177   :  { %5806 = vmatprep.subr.mxu1 %v8099_v45  ;;  %5770 = vmatpush3.msra.mxu0 %v6713_v40 }
 0x178   :  { %5807 = vmatpush3.msra.mxu1 %v8099_v45  ;;  %5771 = vmatprep.subr.mxu0 %v6723_v44  ;;  %v8103_v45 = vld [vmem:[#allocation37_spill] sm:$0xff] }
 0x179   :  { %5808 = vmatprep.subr.mxu1 %v8100_v9  ;;  %5772 = vmatpush3.msra.mxu0 %v6723_v44 }
 0x17a   :  { %5809 = vmatpush3.msra.mxu1 %v8100_v9  ;;  %5773 = vmatprep.subr.mxu0 %v6737_v49  ;;  %v8104_v9 = vld [vmem:[#allocation39_spill] sm:$0xff] }
 0x17b   :  { %5810 = vmatprep.subr.mxu1 %v8101_v27  ;;  %5774 = vmatpush3.msra.mxu0 %v6737_v49 }
 0x17c   :  { %5811 = vmatpush3.msra.mxu1 %v8101_v27  ;;  %5775 = vmatprep.subr.mxu0 %v6749_v53  ;;  %v8105_v27 = vld [vmem:[#allocation41_spill] sm:$0xff] }
 0x17d   :  { %5812 = vmatprep.subr.mxu1 %v8102_v41  ;;  %5776 = vmatpush3.msra.mxu0 %v6749_v53 }
 0x17e   :  { %5813 = vmatpush3.msra.mxu1 %v8102_v41  ;;  %5777 = vmatprep.subr.mxu0 %v6838_v14  ;;  %v8106_v41 = vld [vmem:[#allocation44_spill] sm:$0xff] }
 0x17f   :  { %5814 = vmatprep.subr.mxu1 %v8103_v45  ;;  %5778 = vmatpush3.msra.mxu0 %v6838_v14 }
 0x180   :  { %5815 = vmatpush3.msra.mxu1 %v8103_v45  ;;  %5779 = vmatprep.subr.mxu0 %v6843_v20  ;;  %v8107_v45 = vld [vmem:[#allocation45_spill] sm:$0xff] }
 0x181   :  { %5816 = vmatprep.subr.mxu1 %v8104_v9  ;;  %5780 = vmatpush3.msra.mxu0 %v6843_v20 }
 0x182   :  { %5817 = vmatpush3.msra.mxu1 %v8104_v9  ;;  %5781 = vmatprep.subr.mxu0 %v6853_v26  ;;  %v8108_v9 = vld [vmem:[#allocation47_spill] sm:$0xff] }
 0x183   :  { %5818 = vmatprep.subr.mxu1 %v8105_v27  ;;  %5782 = vmatpush3.msra.mxu0 %v6853_v26 }
 0x184   :  { %5819 = vmatpush3.msra.mxu1 %v8105_v27  ;;  %5783 = vmatprep.subr.mxu0 %v6865_v37  ;;  %v8109_v27 = vld [vmem:[#allocation48_spill] sm:$0xff] }
 0x185   :  { %5820 = vmatprep.subr.mxu1 %v8106_v41  ;;  %5784 = vmatpush3.msra.mxu0 %v6865_v37 }
 0x186   :  { %5821 = vmatpush3.msra.mxu1 %v8106_v41  ;;  %5785 = vmatprep.subr.mxu0 %v6880_v59 }
 0x187   :  { %5822 = vmatprep.subr.mxu1 %v8107_v45  ;;  %5786 = vmatpush3.msra.mxu0 %v6880_v59 }
 0x188   :  { %5823 = vmatpush3.msra.mxu1 %v8107_v45  ;;  %5787 = vmatprep.subr.mxu0 %v6891_v12 }
 0x189   :  { %5824 = vmatprep.subr.mxu1 %v8108_v9  ;;  %5788 = vmatpush3.msra.mxu0 %v6891_v12 }
 0x18a   :  { %5825 = vmatpush3.msra.mxu1 %v8108_v9  ;;  %5789 = vmatprep.subr.mxu0 %v6906_v11 }
 0x18b   :  { %5826 = vmatprep.subr.mxu1 %v8109_v27  ;;  %5790 = vmatpush3.msra.mxu0 %v6906_v11 }
 0x18c   :  { %5827 = vmatpush3.msra.mxu1 %v8109_v27  ;;  %5791 = vmatprep.subr.mxu0 %v6923_v6 }
 0x18d   :  { %5866 = vmatprep.subr.mxu1 %v6680_v19  ;;  %5792 = vmatpush3.msra.mxu0 %v6923_v6 }
 0x18e   :  { %5831 = vmatprep.subr.mxu0 %v6694_v31 }
 0x1d4   :  { %v5578_v45 = vpop.f32.mrf.mxu1 }
 0x1d6   :  { %v852_v9 = vpop.f32.mrf.mxu1 }
 0x1dc   :  { %v5543_v41 = vpop.f32.mrf.mxu0 }
 0x1dd   :  { %v859_v4 = vadd.f32 %v5578_v45, %v5543_v41 }
 0x1de   :  { %v691_v8 = vpop.f32.mrf.mxu0 }
 0x1df   :  { %v853_v15 = vadd.f32 %v852_v9, %v691_v8 }
 0x1f5   :  { %v5648_v21 = vpop.f32.mrf.mxu1 }
 0x1f7   :  { %v1058_v30 = vpop.f32.mrf.mxu1 }
 0x1fd   :  { %v5613_v2 = vpop.f32.mrf.mxu0 }
 0x1fe   :  { %v970_v50 = vadd.f32 %v5613_v2, %v859_v4 }
 0x1ff   :  { %v962_v28 = vpop.f32.mrf.mxu0 }
 0x200   :  { %v963_v54 = vadd.f32 %v962_v28, %v853_v15  ;;  %v1067_v27 = vadd.f32 %v5648_v21, %v970_v50 }
 0x202   :  { %v1059_v13 = vadd.f32 %v1058_v30, %v963_v54 }
 0x217   :  { %v5718_v10 = vpop.f32.mrf.mxu1 }
 0x219   :  { %v1278_v7 = vpop.f32.mrf.mxu1 }
 0x21d   :  { %v5732_v5 = vpop.f32.mrf.mxu1 }
 0x21e   :  { %v5683_v33 = vpop.f32.mrf.mxu0 }
 0x21f   :  { %v1192_v18 = vadd.f32 %v5683_v33, %v1067_v27  ;;  %v1454_v8 = vpop.f32.mrf.mxu1 }
 0x220   :  { %v1185_v62 = vpop.f32.mrf.mxu0 }
 0x221   :  { %v7219_v29 = vadd.f32 %v5718_v10, %v1192_v18  ;;  %v1186_v41 = vadd.f32 %v1185_v62, %v1059_v13 }
 0x222   :  { %v5725_v45 = vpop.f32.mrf.mxu0 }
 0x223   :  { %v7221_v23 = vadd.f32 %v1278_v7, %v1186_v41  ;;  %v1461_v2 = vadd.f32 %v5732_v5, %v5725_v45 }
 0x224   :  { %v1363_v9 = vpop.f32.mrf.mxu0 }
 0x225   :  { %8110 = vst [vmem:[#allocation49_spill] sm:$0xff] %v7221_v23  ;;  %v1455_v28 = vadd.f32 %v1454_v8, %v1363_v9 }
 0x226   :  { %v5739_v4 = vpop.f32.mrf.mxu0 }
 0x227   :  { %v1544_v50 = vadd.f32 %v5739_v4, %v1461_v2  ;;  %v5746_v21 = vpop.f32.mrf.mxu1 }
 0x228   :  { %v1536_v30 = vpop.f32.mrf.mxu0 }
 0x229   :  { %v1627_v54 = vadd.f32 %v5746_v21, %v1544_v50  ;;  %v1537_v15 = vadd.f32 %v1536_v30, %v1455_v28  ;;  %v1618_v3 = vpop.f32.mrf.mxu1  ;;  %v7309_v28 = vld [vmem:[#allocation7 + $0x8] sm:$0xff]  ;;  %v7317_v21 = vld [vmem:[#allocation7] sm:$0xff] }
 0x22a   :  { %v2479_v50 = vadd.f32 %v7309_v28, %v7064_v58  ;;  %v2478_v30 = vadd.f32 %v7317_v21, %v7070_v1 }
 0x22b   :  { %v1619_v33 = vadd.f32 %v1618_v3, %v1537_v15 }
 0x22c   :  { %v5753_v27 = vpop.f32.mrf.mxu0  ;;  %v2483_v58 = vmul.f32 %v2479_v50, %v2479_v50  ;;  %v8119_v50 = vld [vmem:[#allocation43_spill] sm:$0xff] }
 0x22d   :  { %v1710_v0 = vadd.f32 %v5753_v27, %v1627_v54  ;;  %v5760_v18 = vpop.f32.mrf.mxu1  ;;  %v2482_v54 = vmul.f32 %v2478_v30, %v2478_v30  ;;  %v8111_v27 = vld [vmem:[#allocation26_spill] sm:$0xff] }
 0x22e   :  { %v1703_v10 = vpop.f32.mrf.mxu0  ;;  %v7333_v1 = vand.u32 4294901760, %v2483_v58  ;;  %v8120_v30 = vld [vmem:[#allocation46_spill] sm:$0xff] }
 0x22f   :  { %v1789_v62 = vadd.f32 %v5760_v18, %v1710_v0  ;;  %v1704_v13 = vadd.f32 %v1703_v10, %v1619_v33  ;;  %v1782_v7 = vpop.f32.mrf.mxu1  ;;  %v7339_v15 = vand.u32 4294901760, %v2482_v54  ;;  %v8112_v10 = vld [vmem:[#allocation28_spill] sm:$0xff] }
 0x230   :  { %v2601_v33 = vsub.f32 %v2483_v58, %v7333_v1  ;;  %v8121_v58 = vld [vmem:[#allocation15_spill] sm:$0xff] }
 0x231   :  { %v7223_v41 = vand.u32 4294901760, %v1789_v62  ;;  %v1783_v23 = vadd.f32 %v1782_v7, %v1704_v13  ;;  %v2608_v18 = vsub.f32 %v2482_v54, %v7339_v15  ;;  %v8113_v13 = vld [vmem:[#allocation33_spill] sm:$0xff]  ;;  %v8122_v54 = vld [vmem:[#allocation16_spill] sm:$0xff] }
 0x233   :  { %v7226_v5 = vsub.f32 %v1789_v62, %v7223_v41  ;;  %v7228_v45 = vand.u32 4294901760, %v1783_v23  ;;  %v2602_v62 = vand.u32 4294901760, %v2601_v33  ;;  %v2609_v7 = vand.u32 4294901760, %v2608_v18 }
 0x235   :  { %v1885_v8 = vand.u32 4294901760, %v7226_v5  ;;  %v1874_v9 = vsub.f32 %v1783_v23, %v7228_v45  ;;  %5828 = vmatprep.mubr.f32.mxu1 %v7228_v45 }
 0x236   :  { %5829 = vmatmul.mubr.f32.vlgmr.msra.gmra.mxu1 %v7223_v41 }
 0x237   :  { %5867 = vmatpush3.msra.mxu1 %v6680_v19  ;;  %v1875_v0 = vand.u32 4294901760, %v1874_v9  ;;  %v1886_v3 = vsub.f32 %v7226_v5, %v1885_v8 }
 0x238   :  { %5868 = vmatprep.subr.mxu1 %v6687_v25 }
 0x239   :  { %5869 = vmatpush3.msra.mxu1 %v6687_v25  ;;  %5898 = vmatprep.mubr.f32.mxu1 %v1875_v0  ;;  %v1876_v2 = vsub.f32 %v1874_v9, %v1875_v0  ;;  %v1887_v4 = vand.u32 4294901760, %v1886_v3  ;;  %v8116_v0 = vld [vmem:[#allocation38_spill] sm:$0xff] }
 0x23a   :  { %5870 = vmatprep.subr.mxu1 %v6696_v32 }
 0x23b   :  { %5871 = vmatpush3.msra.mxu1 %v6696_v32  ;;  %v1877_v23 = vand.u32 4294901760, %v1876_v2  ;;  %v8117_v2 = vld [vmem:[#allocation40_spill] sm:$0xff] }
 0x23c   :  { %5872 = vmatprep.subr.mxu1 %v6704_v36 }
 0x23d   :  { %5873 = vmatpush3.msra.mxu1 %v6704_v36  ;;  %5793 = vmatprep.mubr.f32.mxu0 %v1877_v23 }
 0x23e   :  { %5874 = vmatprep.subr.mxu1 %v6713_v40  ;;  %5794 = vmatmul.mubr.f32.vlgmr.msra.gmra.mxu0 %v1887_v4  ;;  %v8118_v4 = vld [vmem:[#allocation42_spill] sm:$0xff] }
 0x23f   :  { %5832 = vmatpush3.msra.mxu0 %v6694_v31  ;;  %5875 = vmatpush3.msra.mxu1 %v6713_v40 }
 0x240   :  { %5833 = vmatprep.subr.mxu0 %v6702_v35  ;;  %5863 = vmatprep.mubr.f32.mxu0 %v1874_v9  ;;  %v2610_v9 = vsub.f32 %v2608_v18, %v2609_v7 }
 0x241   :  { %5876 = vmatprep.subr.mxu1 %v6723_v44  ;;  %5834 = vmatpush3.msra.mxu0 %v6702_v35 }
 0x242   :  { %5877 = vmatpush3.msra.mxu1 %v6723_v44  ;;  %5835 = vmatprep.subr.mxu0 %v6711_v39  ;;  %v2611_v23 = vand.u32 4294901760, %v2610_v9  ;;  %v8124_v9 = vld [vmem:[#allocation22_spill] sm:$0xff] }
 0x243   :  { %5878 = vmatprep.subr.mxu1 %v6737_v49  ;;  %5836 = vmatpush3.msra.mxu0 %v6711_v39 }
 0x244   :  { %5879 = vmatpush3.msra.mxu1 %v6737_v49  ;;  %5837 = vmatprep.subr.mxu0 %v6721_v43 }
 0x245   :  { %5880 = vmatprep.subr.mxu1 %v6749_v53  ;;  %5838 = vmatpush3.msra.mxu0 %v6721_v43 }
 0x246   :  { %5881 = vmatpush3.msra.mxu1 %v6749_v53  ;;  %5839 = vmatprep.subr.mxu0 %v6735_v48 }
 0x247   :  { %5882 = vmatprep.subr.mxu1 %v6838_v14  ;;  %5840 = vmatpush3.msra.mxu0 %v6735_v48 }
 0x248   :  { %5883 = vmatpush3.msra.mxu1 %v6838_v14  ;;  %5841 = vmatprep.subr.mxu0 %v6747_v52 }
 0x249   :  { %5884 = vmatprep.subr.mxu1 %v6843_v20  ;;  %5842 = vmatpush3.msra.mxu0 %v6747_v52 }
 0x24a   :  { %5885 = vmatpush3.msra.mxu1 %v6843_v20  ;;  %5843 = vmatprep.subr.mxu0 %v6761_v57 }
 0x24b   :  { %5886 = vmatprep.subr.mxu1 %v6853_v26  ;;  %5844 = vmatpush3.msra.mxu0 %v6761_v57 }
 0x24c   :  { %5887 = vmatpush3.msra.mxu1 %v6853_v26  ;;  %5845 = vmatprep.subr.mxu0 %v6775_v61 }
 0x24d   :  { %5888 = vmatprep.subr.mxu1 %v6865_v37  ;;  %5846 = vmatpush3.msra.mxu0 %v6775_v61 }
 0x24e   :  { %5889 = vmatpush3.msra.mxu1 %v6865_v37  ;;  %5847 = vmatprep.subr.mxu0 %v6841_v17 }
 0x24f   :  { %5890 = vmatprep.subr.mxu1 %v6880_v59  ;;  %5848 = vmatpush3.msra.mxu0 %v6841_v17 }
 0x250   :  { %5891 = vmatpush3.msra.mxu1 %v6880_v59  ;;  %5849 = vmatprep.subr.mxu0 %v6851_v24 }
 0x251   :  { %5892 = vmatprep.subr.mxu1 %v6891_v12  ;;  %5850 = vmatpush3.msra.mxu0 %v6851_v24 }
 0x252   :  { %5893 = vmatpush3.msra.mxu1 %v6891_v12  ;;  %5851 = vmatprep.subr.mxu0 %v6863_v34 }
 0x253   :  { %5894 = vmatprep.subr.mxu1 %v6906_v11  ;;  %5852 = vmatpush3.msra.mxu0 %v6863_v34 }
 0x254   :  { %5895 = vmatpush3.msra.mxu1 %v6906_v11  ;;  %5853 = vmatprep.subr.mxu0 %v6877_v55 }
 0x255   :  { %5896 = vmatprep.subr.mxu1 %v6923_v6  ;;  %5854 = vmatpush3.msra.mxu0 %v6877_v55 }
 0x256   :  { %5897 = vmatpush3.msra.mxu1 %v6923_v6  ;;  %5855 = vmatprep.subr.mxu0 %v6895_v16 }
 0x257   :  { %5899 = vmatmul.mubr.f32.vlgmr.msra.gmra.mxu1 %v1885_v8  ;;  %5936 = vmatprep.subr.mxu1 %v6680_v19  ;;  %v8115_v8 = vld [vmem:[#allocation36_spill] sm:$0xff] }
 0x258   :  { %5856 = vmatpush3.msra.mxu0 %v6895_v16  ;;  %5937 = vmatpush3.msra.mxu1 %v6680_v19 }
 0x259   :  { %5968 = vmatprep.mubr.f32.mxu1 %v7228_v45  ;;  %5857 = vmatprep.subr.mxu0 %v6904_v46 }
 0x25a   :  { %5938 = vmatprep.subr.mxu1 %v6687_v25  ;;  %5858 = vmatpush3.msra.mxu0 %v6904_v46 }
 0x25b   :  { %5939 = vmatpush3.msra.mxu1 %v6687_v25  ;;  %5859 = vmatprep.subr.mxu0 %v6921_v63 }
 0x25c   :  { %5940 = vmatprep.subr.mxu1 %v6696_v32  ;;  %5860 = vmatpush3.msra.mxu0 %v6921_v63 }
 0x25d   :  { %5941 = vmatpush3.msra.mxu1 %v6696_v32  ;;  %5861 = vmatprep.subr.mxu0 %v6937_v22 }
 0x25e   :  { %5942 = vmatprep.subr.mxu1 %v6704_v36  ;;  %5862 = vmatpush3.msra.mxu0 %v6937_v22 }
 0x25f   :  { %5943 = vmatpush3.msra.mxu1 %v6704_v36  ;;  %5864 = vmatmul.mubr.f32.vlgmr.msra.gmra.mxu0 %v7226_v5  ;;  %v8114_v5 = vld [vmem:[#allocation34_spill] sm:$0xff] }
 0x260   :  { %5901 = vmatprep.subr.mxu0 %v6708_v38  ;;  %5944 = vmatprep.subr.mxu1 %v6713_v40 }
 0x261   :  { %5902 = vmatpush3.msra.mxu0 %v6708_v38  ;;  %5933 = vmatprep.mubr.f32.mxu0 %v7228_v45  ;;  %v2603_v45 = vsub.f32 %v2601_v33, %v2602_v62 }
 0x262   :  { %5945 = vmatpush3.msra.mxu1 %v6713_v40  ;;  %5903 = vmatprep.subr.mxu0 %v6718_v42 }
 0x263   :  { %5946 = vmatprep.subr.mxu1 %v6723_v44  ;;  %5904 = vmatpush3.msra.mxu0 %v6718_v42  ;;  %v2604_v3 = vand.u32 4294901760, %v2603_v45  ;;  %v8123_v45 = vld [vmem:[#allocation21_spill] sm:$0xff] }
 0x264   :  { %5947 = vmatpush3.msra.mxu1 %v6723_v44  ;;  %5905 = vmatprep.subr.mxu0 %v6732_v47 }
 0x265   :  { %5948 = vmatprep.subr.mxu1 %v6737_v49  ;;  %5906 = vmatpush3.msra.mxu0 %v6732_v47 }
 0x266   :  { %5949 = vmatpush3.msra.mxu1 %v6737_v49  ;;  %5907 = vmatprep.subr.mxu0 %v6744_v51 }
 0x267   :  { %5950 = vmatprep.subr.mxu1 %v6749_v53  ;;  %5908 = vmatpush3.msra.mxu0 %v6744_v51 }
 0x268   :  { %5951 = vmatpush3.msra.mxu1 %v6749_v53  ;;  %5909 = vmatprep.subr.mxu0 %v6758_v56 }
 0x269   :  { %5952 = vmatprep.subr.mxu1 %v6838_v14  ;;  %5910 = vmatpush3.msra.mxu0 %v6758_v56 }
 0x26a   :  { %5953 = vmatpush3.msra.mxu1 %v6838_v14  ;;  %5911 = vmatprep.subr.mxu0 %v6772_v60 }
 0x26b   :  { %5954 = vmatprep.subr.mxu1 %v6843_v20  ;;  %5912 = vmatpush3.msra.mxu0 %v6772_v60 }
 0x26c   :  { %5955 = vmatpush3.msra.mxu1 %v6843_v20  ;;  %5913 = vmatprep.subr.mxu0 %v8111_v27 }
 0x26d   :  { %5956 = vmatprep.subr.mxu1 %v6853_v26  ;;  %5914 = vmatpush3.msra.mxu0 %v8111_v27 }
 0x26e   :  { %5957 = vmatpush3.msra.mxu1 %v6853_v26  ;;  %5915 = vmatprep.subr.mxu0 %v8112_v10 }
 0x26f   :  { %5958 = vmatprep.subr.mxu1 %v6865_v37  ;;  %5916 = vmatpush3.msra.mxu0 %v8112_v10  ;;  %v8145_v10 = vld [vmem:[#allocation49_spill] sm:$0xff] }
 0x270   :  { %5959 = vmatpush3.msra.mxu1 %v6865_v37  ;;  %5917 = vmatprep.subr.mxu0 %v8113_v13 }
 0x271   :  { %5960 = vmatprep.subr.mxu1 %v6880_v59  ;;  %5918 = vmatpush3.msra.mxu0 %v8113_v13 }
 0x272   :  { %5961 = vmatpush3.msra.mxu1 %v6880_v59  ;;  %5919 = vmatprep.subr.mxu0 %v8114_v5 }
 0x273   :  { %5962 = vmatprep.subr.mxu1 %v6891_v12  ;;  %5920 = vmatpush3.msra.mxu0 %v8114_v5  ;;  %v1289_v5 = vmul.f32 0.008264462, %v7219_v29 }
 0x274   :  { %5963 = vmatpush3.msra.mxu1 %v6891_v12  ;;  %5921 = vmatprep.subr.mxu0 %v8115_v8 }
 0x275   :  { %5964 = vmatprep.subr.mxu1 %v6906_v11  ;;  %5922 = vmatpush3.msra.mxu0 %v8115_v8 }
 0x276   :  { %5965 = vmatpush3.msra.mxu1 %v6906_v11  ;;  %5923 = vmatprep.subr.mxu0 %v8116_v0 }
 0x277   :  { %5966 = vmatprep.subr.mxu1 %v6923_v6  ;;  %5924 = vmatpush3.msra.mxu0 %v8116_v0 }
 0x278   :  { %5967 = vmatpush3.msra.mxu1 %v6923_v6  ;;  %5925 = vmatprep.subr.mxu0 %v8117_v2 }
 0x279   :  { %5969 = vmatmul.mubr.f32.vlgmr.msra.gmra.mxu1 %v7223_v41  ;;  %5926 = vmatpush3.msra.mxu0 %v8117_v2 }
 0x27a   :  { %5927 = vmatprep.subr.mxu0 %v8118_v4  ;;  %5978 = vmatprep.subr.mxu1 %v2604_v3 }
 0x27b   :  { %5928 = vmatpush3.msra.mxu0 %v8118_v4  ;;  %5979 = vmatpush3.msra.mxu1 %v2604_v3  ;;  %v8126_v3 = vld [vmem:[#allocation19_spill] sm:$0xff] }
 0x27c   :  { %5929 = vmatprep.subr.mxu0 %v8119_v50  ;;  %5980 = vmatprep.subr.mxu1 %v2611_v23 }
 0x27d   :  { %5930 = vmatpush3.msra.mxu0 %v8119_v50  ;;  %5981 = vmatpush3.msra.mxu1 %v2611_v23  ;;  %v8127_v23 = vld [vmem:[#allocation18_spill] sm:$0xff] }
 0x27e   :  { %5931 = vmatprep.subr.mxu0 %v8120_v30  ;;  %5982 = vmatprep.mubr.f32.mxu1 %v8121_v58 }
 0x27f   :  { %5932 = vmatpush3.msra.mxu0 %v8120_v30  ;;  %5983 = vmatmul.mubr.f32.vlgmr.msra.gmra.mxu1 %v8122_v54 }
 0x280   :  { %5934 = vmatmul.mubr.f32.vlgmr.msra.gmra.mxu0 %v7223_v41  ;;  %5971 = vmatprep.subr.mxu0 %v7333_v1  ;;  %v8125_v41 = vld [vmem:[#allocation17_spill] sm:$0xff] }
 0x281   :  { %5972 = vmatpush3.msra.mxu0 %v7333_v1  ;;  %5975 = vmatprep.mubr.f32.mxu0 %v8123_v45  ;;  %v8128_v45 = vld [vmem:[#allocation20_spill] sm:$0xff] }
 0x282   :  { %5973 = vmatprep.subr.mxu0 %v7339_v15  ;;  %5992 = vmatprep.subr.mxu1 %v7333_v1 }
 0x283   :  { %5974 = vmatpush3.msra.mxu0 %v7339_v15  ;;  %5993 = vmatpush3.msra.mxu1 %v7333_v1 }
 0x284   :  { %5976 = vmatmul.mubr.f32.vlgmr.msra.gmra.mxu0 %v8124_v9  ;;  %5985 = vmatprep.subr.mxu0 %v2601_v33 }
 0x285   :  { %5986 = vmatpush3.msra.mxu0 %v2601_v33  ;;  %5994 = vmatprep.subr.mxu1 %v7339_v15  ;;  %v8129_v33 = vld [vmem:[#allocation23_spill] sm:$0xff] }
 0x286   :  { %5987 = vmatprep.subr.mxu0 %v2608_v18  ;;  %5989 = vmatprep.mubr.f32.mxu0 %v8125_v41 }
 0x287   :  { %5988 = vmatpush3.msra.mxu0 %v2608_v18  ;;  %5995 = vmatpush3.msra.mxu1 %v7339_v15  ;;  %v8132_v18 = vld [vmem:[#allocation27_spill] sm:$0xff] }
 0x288   :  { %5996 = vmatprep.mubr.f32.mxu1 %v8126_v3  ;;  %5990 = vmatmul.mubr.f32.vlgmr.msra.gmra.mxu0 %v8127_v23 }
 0x289   :  { %5997 = vmatmul.mubr.f32.vlgmr.msra.gmra.mxu1 %v8128_v45  ;;  %5999 = vmatprep.subr.mxu0 %v2602_v62 }
 0x28a   :  { %6006 = vmatprep.subr.mxu1 %v7333_v1  ;;  %6000 = vmatpush3.msra.mxu0 %v2602_v62  ;;  %v8133_v62 = vld [vmem:[#allocation29_spill] sm:$0xff] }
 0x28b   :  { %6007 = vmatpush3.msra.mxu1 %v7333_v1  ;;  %6001 = vmatprep.subr.mxu0 %v2609_v7  ;;  %v8130_v1 = vld [vmem:[#allocation24_spill] sm:$0xff] }
 0x28c   :  { %6008 = vmatprep.subr.mxu1 %v7339_v15  ;;  %6002 = vmatpush3.msra.mxu0 %v2609_v7  ;;  %v8134_v7 = vld [vmem:[#allocation30_spill] sm:$0xff] }
 0x28d   :  { %6003 = vmatprep.mubr.f32.mxu0 %v8121_v58  ;;  %6009 = vmatpush3.msra.mxu1 %v7339_v15  ;;  %v8131_v15 = vld [vmem:[#allocation25_spill] sm:$0xff] }
 0x28e   :  { %6010 = vmatprep.mubr.f32.mxu1 %v8121_v58  ;;  %6004 = vmatmul.mubr.f32.vlgmr.msra.gmra.mxu0 %v8122_v54 }
 0x28f   :  { %6011 = vmatmul.mubr.f32.vlgmr.msra.gmra.mxu1 %v8122_v54  ;;  %6048 = vmatprep.subr.mxu1 %v8129_v33 }
 0x290   :  { %6049 = vmatpush3.msra.mxu1 %v8129_v33  ;;  %6013 = vmatprep.subr.mxu0 %v6680_v19 }
 0x291   :  { %6050 = vmatprep.subr.mxu1 %v8130_v1  ;;  %6014 = vmatpush3.msra.mxu0 %v6680_v19 }
 0x292   :  { %6051 = vmatpush3.msra.mxu1 %v8130_v1  ;;  %6015 = vmatprep.subr.mxu0 %v6687_v25 }
 0x293   :  { %6052 = vmatprep.subr.mxu1 %v8131_v15  ;;  %6016 = vmatpush3.msra.mxu0 %v6687_v25 }
 0x294   :  { %6053 = vmatpush3.msra.mxu1 %v8131_v15  ;;  %6017 = vmatprep.subr.mxu0 %v6696_v32  ;;  %v8135_v15 = vld [vmem:[#allocation31_spill] sm:$0xff] }
 0x295   :  { %6054 = vmatprep.subr.mxu1 %v8132_v18  ;;  %6018 = vmatpush3.msra.mxu0 %v6696_v32 }
 0x296   :  { %6055 = vmatpush3.msra.mxu1 %v8132_v18  ;;  %6019 = vmatprep.subr.mxu0 %v6704_v36  ;;  %v8136_v18 = vld [vmem:[#allocation32_spill] sm:$0xff] }
 0x297   :  { %6056 = vmatprep.subr.mxu1 %v8133_v62  ;;  %6020 = vmatpush3.msra.mxu0 %v6704_v36 }
 0x298   :  { %6057 = vmatpush3.msra.mxu1 %v8133_v62  ;;  %6021 = vmatprep.subr.mxu0 %v6713_v40  ;;  %v8137_v62 = vld [vmem:[#allocation35_spill] sm:$0xff] }
 0x299   :  { %6058 = vmatprep.subr.mxu1 %v8134_v7  ;;  %6022 = vmatpush3.msra.mxu0 %v6713_v40 }
 0x29a   :  { %6059 = vmatpush3.msra.mxu1 %v8134_v7  ;;  %6023 = vmatprep.subr.mxu0 %v6723_v44  ;;  %v8138_v7 = vld [vmem:[#allocation37_spill] sm:$0xff] }
 0x29b   :  { %6060 = vmatprep.subr.mxu1 %v8135_v15  ;;  %6024 = vmatpush3.msra.mxu0 %v6723_v44 }
 0x29c   :  { %6061 = vmatpush3.msra.mxu1 %v8135_v15  ;;  %6025 = vmatprep.subr.mxu0 %v6737_v49  ;;  %v8139_v15 = vld [vmem:[#allocation39_spill] sm:$0xff] }
 0x29d   :  { %6062 = vmatprep.subr.mxu1 %v8136_v18  ;;  %6026 = vmatpush3.msra.mxu0 %v6737_v49 }
 0x29e   :  { %6063 = vmatpush3.msra.mxu1 %v8136_v18  ;;  %6027 = vmatprep.subr.mxu0 %v6749_v53  ;;  %v8140_v18 = vld [vmem:[#allocation41_spill] sm:$0xff] }
 0x29f   :  { %6064 = vmatprep.subr.mxu1 %v8137_v62  ;;  %6028 = vmatpush3.msra.mxu0 %v6749_v53 }
 0x2a0   :  { %6065 = vmatpush3.msra.mxu1 %v8137_v62  ;;  %6029 = vmatprep.subr.mxu0 %v6838_v14  ;;  %v8141_v62 = vld [vmem:[#allocation44_spill] sm:$0xff] }
 0x2a1   :  { %6066 = vmatprep.subr.mxu1 %v8138_v7  ;;  %6030 = vmatpush3.msra.mxu0 %v6838_v14 }
 0x2a2   :  { %6067 = vmatpush3.msra.mxu1 %v8138_v7  ;;  %6031 = vmatprep.subr.mxu0 %v6843_v20  ;;  %v8142_v7 = vld [vmem:[#allocation45_spill] sm:$0xff] }
 0x2a3   :  { %6068 = vmatprep.subr.mxu1 %v8139_v15  ;;  %6032 = vmatpush3.msra.mxu0 %v6843_v20 }
 0x2a4   :  { %6069 = vmatpush3.msra.mxu1 %v8139_v15  ;;  %6033 = vmatprep.subr.mxu0 %v6853_v26  ;;  %v8143_v15 = vld [vmem:[#allocation47_spill] sm:$0xff] }
 0x2a5   :  { %6070 = vmatprep.subr.mxu1 %v8140_v18  ;;  %6034 = vmatpush3.msra.mxu0 %v6853_v26 }
 0x2a6   :  { %6071 = vmatpush3.msra.mxu1 %v8140_v18  ;;  %6035 = vmatprep.subr.mxu0 %v6865_v37  ;;  %v8144_v18 = vld [vmem:[#allocation48_spill] sm:$0xff] }
 0x2a7   :  { %6072 = vmatprep.subr.mxu1 %v8141_v62  ;;  %6036 = vmatpush3.msra.mxu0 %v6865_v37 }
 0x2a8   :  { %6073 = vmatpush3.msra.mxu1 %v8141_v62  ;;  %6037 = vmatprep.subr.mxu0 %v6880_v59 }
 0x2a9   :  { %6074 = vmatprep.subr.mxu1 %v8142_v7  ;;  %6038 = vmatpush3.msra.mxu0 %v6880_v59 }
 0x2aa   :  { %6075 = vmatpush3.msra.mxu1 %v8142_v7  ;;  %6039 = vmatprep.subr.mxu0 %v6891_v12 }
 0x2ab   :  { %6076 = vmatprep.subr.mxu1 %v8143_v15  ;;  %6040 = vmatpush3.msra.mxu0 %v6891_v12 }
 0x2ac   :  { %6077 = vmatpush3.msra.mxu1 %v8143_v15  ;;  %6041 = vmatprep.subr.mxu0 %v6906_v11 }
 0x2ad   :  { %6078 = vmatprep.subr.mxu1 %v8144_v18  ;;  %6042 = vmatpush3.msra.mxu0 %v6906_v11 }
 0x2ae   :  { %6079 = vmatpush3.msra.mxu1 %v8144_v18  ;;  %6043 = vmatprep.subr.mxu0 %v6923_v6 }
 0x2af   :  { %6118 = vmatprep.subr.mxu1 %v6680_v19  ;;  %6044 = vmatpush3.msra.mxu0 %v6923_v6 }
 0x2b0   :  { %6083 = vmatprep.subr.mxu0 %v6694_v31 }
 0x2f6   :  { %v5830_v7 = vpop.f32.mrf.mxu1 }
 0x2f8   :  { %v2040_v15 = vpop.f32.mrf.mxu1 }
 0x2fe   :  { %v5795_v62 = vpop.f32.mrf.mxu0 }
 0x2ff   :  { %v2047_v1 = vadd.f32 %v5830_v7, %v5795_v62 }
 0x300   :  { %v1879_v33 = vpop.f32.mrf.mxu0 }
 0x301   :  { %v2041_v45 = vadd.f32 %v2040_v15, %v1879_v33  ;;  %v1288_v33 = vmul.f32 0.008264462, %v8145_v10 }
 0x317   :  { %v5900_v3 = vpop.f32.mrf.mxu1 }
 0x319   :  { %v2246_v58 = vpop.f32.mrf.mxu1 }
 0x31f   :  { %v5865_v23 = vpop.f32.mrf.mxu0 }
 0x320   :  { %v2158_v41 = vadd.f32 %v5865_v23, %v2047_v1 }
 0x321   :  { %v2150_v9 = vpop.f32.mrf.mxu0 }
 0x322   :  { %v2151_v54 = vadd.f32 %v2150_v9, %v2041_v45  ;;  %v2255_v18 = vadd.f32 %v5900_v3, %v2158_v41  ;;  %v7476_v45 = vmul.f32 %v1289_v5, %v1289_v5  ;;  %v7482_v3 = vmul.f32 %v1288_v33, %v1288_v33 }
 0x324   :  { %v2247_v30 = vadd.f32 %v2246_v58, %v2151_v54  ;;  %8146 = vst [vmem:[#allocation49_spill] sm:$0xff] %v7476_v45  ;;  %8149 = vst [vmem:[#allocation52_spill] sm:$0xff] %v7482_v3 }
 0x339   :  { %v5970_v50 = vpop.f32.mrf.mxu1 }
 0x33b   :  { %v2466_v4 = vpop.f32.mrf.mxu1 }
 0x33f   :  { %v5984_v8 = vpop.f32.mrf.mxu1 }
 0x340   :  { %v5935_v2 = vpop.f32.mrf.mxu0 }
 0x341   :  { %v2380_v0 = vadd.f32 %v5935_v2, %v2255_v18  ;;  %v2648_v1 = vpop.f32.mrf.mxu1 }
 0x342   :  { %v2373_v13 = vpop.f32.mrf.mxu0 }
 0x343   :  { %v2473_v62 = vadd.f32 %v5970_v50, %v2380_v0  ;;  %v2374_v7 = vadd.f32 %v2373_v13, %v2247_v30 }
 0x344   :  { %v5977_v15 = vpop.f32.mrf.mxu0 }
 0x345   :  { %v2477_v27 = vmul.f32 0.008264462, %v2473_v62  ;;  %v2467_v23 = vadd.f32 %v2466_v4, %v2374_v7  ;;  %v2655_v41 = vadd.f32 %v5984_v8, %v5977_v15 }
 0x346   :  { %v2557_v9 = vpop.f32.mrf.mxu0 }
 0x347   :  { %v7478_v58 = vmul.f32 %v2477_v27, %v1289_v5  ;;  %v7480_v54 = vmul.f32 %v2477_v27, %v2477_v27  ;;  %v2476_v2 = vmul.f32 0.008264462, %v2467_v23  ;;  %v2649_v29 = vadd.f32 %v2648_v1, %v2557_v9 }
 0x348   :  { %v5991_v0 = vpop.f32.mrf.mxu0 }
 0x349   :  { %8147 = vst [vmem:[#allocation50_spill] sm:$0xff] %v7478_v58  ;;  %8148 = vst [vmem:[#allocation51_spill] sm:$0xff] %v7480_v54  ;;  %v7486_v10 = vadd.f32 %v7480_v54, %v7476_v45  ;;  %v7488_v13 = vmul.f32 %v2476_v2, %v1288_v33  ;;  %v7490_v4 = vmul.f32 %v2476_v2, %v2476_v2  ;;  %v5998_v30 = vpop.f32.mrf.mxu1 }
 0x34a   :  { %v2738_v50 = vadd.f32 %v5991_v0, %v2655_v41  ;;  %v2730_v5 = vpop.f32.mrf.mxu0 }
 0x34b   :  { %8150 = vst [vmem:[#allocation53_spill] sm:$0xff] %v7486_v10  ;;  %8151 = vst [vmem:[#allocation54_spill] sm:$0xff] %v7488_v13  ;;  %v7494_v27 = vadd.f32 %v7490_v4, %v7482_v3  ;;  %v2731_v18 = vadd.f32 %v2730_v5, %v2649_v29  ;;  %v2812_v62 = vpop.f32.mrf.mxu1 }
 0x34c   :  { %8152 = vst [vmem:[#allocation55_spill] sm:$0xff] %v7490_v4  ;;  %v2821_v8 = vadd.f32 %v5998_v30, %v2738_v50  ;;  %v8171_v4 = vld [vmem:[#allocation20_spill] sm:$0xff] }
 0x34d   :  { %8153 = vst [vmem:[#allocation56_spill] sm:$0xff] %v7494_v27  ;;  %v2813_v7 = vadd.f32 %v2812_v62, %v2731_v18  ;;  %v6490_v18 = vld [vmem:[#allocation8 + $0x8] sm:$0xff] }
 0x34e   :  { %v6005_v15 = vpop.f32.mrf.mxu0  ;;  %v2481_v62 = vsub.f32 %v7309_v28, %v6490_v18  ;;  %v8168_v27 = vld [vmem:[#allocation17_spill] sm:$0xff] }
 0x34f   :  { %v2904_v23 = vadd.f32 %v6005_v15, %v2821_v8  ;;  %v6012_v1 = vpop.f32.mrf.mxu1 }
 0x350   :  { %v2897_v9 = vpop.f32.mrf.mxu0  ;;  %v3673_v28 = vmul.f32 %v2481_v62, %v2481_v62  ;;  %v8160_v62 = vld [vmem:[#allocation40_spill] sm:$0xff] }
 0x351   :  { %v2983_v10 = vadd.f32 %v6012_v1, %v2904_v23  ;;  %v2898_v33 = vadd.f32 %v2897_v9, %v2813_v7  ;;  %v2976_v54 = vpop.f32.mrf.mxu1  ;;  %v6491_v7 = vld [vmem:[#allocation8] sm:$0xff]  ;;  %v8154_v9 = vld [vmem:[#allocation26_spill] sm:$0xff] }
 0x352   :  { %v2480_v15 = vsub.f32 %v7317_v21, %v6491_v7  ;;  %v7600_v21 = vand.u32 4294901760, %v3673_v28 }
 0x353   :  { %v7496_v2 = vand.u32 4294901760, %v2983_v10  ;;  %v2977_v41 = vadd.f32 %v2976_v54, %v2898_v33 }
 0x354   :  { %v3672_v23 = vmul.f32 %v2480_v15, %v2480_v15  ;;  %v3791_v1 = vsub.f32 %v3673_v28, %v7600_v21  ;;  %v8161_v15 = vld [vmem:[#allocation42_spill] sm:$0xff]  ;;  %v8162_v28 = vld [vmem:[#allocation43_spill] sm:$0xff] }
 0x355   :  { %v7499_v0 = vsub.f32 %v2983_v10, %v7496_v2  ;;  %v7501_v13 = vand.u32 4294901760, %v2977_v41 }
 0x357   :  { %v3079_v50 = vand.u32 4294901760, %v7499_v0  ;;  %v3068_v29 = vsub.f32 %v2977_v41, %v7501_v13  ;;  %6080 = vmatprep.mubr.f32.mxu1 %v7501_v13  ;;  %v8155_v41 = vld [vmem:[#allocation28_spill] sm:$0xff] }
 0x358   :  { %6081 = vmatmul.mubr.f32.vlgmr.msra.gmra.mxu1 %v7496_v2 }
 0x359   :  { %6119 = vmatpush3.msra.mxu1 %v6680_v19  ;;  %v3069_v30 = vand.u32 4294901760, %v3068_v29  ;;  %v3080_v54 = vsub.f32 %v7499_v0, %v3079_v50 }
 0x35a   :  { %6120 = vmatprep.subr.mxu1 %v6687_v25 }
 0x35b   :  { %6121 = vmatpush3.msra.mxu1 %v6687_v25  ;;  %6150 = vmatprep.mubr.f32.mxu1 %v3069_v30  ;;  %v3070_v10 = vsub.f32 %v3068_v29, %v3069_v30  ;;  %v3081_v8 = vand.u32 4294901760, %v3080_v54  ;;  %v8157_v30 = vld [vmem:[#allocation34_spill] sm:$0xff] }
 0x35c   :  { %6122 = vmatprep.subr.mxu1 %v6696_v32 }
 0x35d   :  { %6123 = vmatpush3.msra.mxu1 %v6696_v32  ;;  %v3071_v5 = vand.u32 4294901760, %v3070_v10  ;;  %v8158_v10 = vld [vmem:[#allocation36_spill] sm:$0xff] }
 0x35e   :  { %6124 = vmatprep.subr.mxu1 %v6704_v36 }
 0x35f   :  { %6125 = vmatpush3.msra.mxu1 %v6704_v36  ;;  %6045 = vmatprep.mubr.f32.mxu0 %v3071_v5 }
 0x360   :  { %6126 = vmatprep.subr.mxu1 %v6713_v40  ;;  %6046 = vmatmul.mubr.f32.vlgmr.msra.gmra.mxu0 %v3081_v8  ;;  %v8159_v8 = vld [vmem:[#allocation38_spill] sm:$0xff] }
 0x361   :  { %6084 = vmatpush3.msra.mxu0 %v6694_v31  ;;  %6127 = vmatpush3.msra.mxu1 %v6713_v40 }
 0x362   :  { %6085 = vmatprep.subr.mxu0 %v6702_v35  ;;  %6115 = vmatprep.mubr.f32.mxu0 %v3068_v29 }
 0x363   :  { %6128 = vmatprep.subr.mxu1 %v6723_v44  ;;  %6086 = vmatpush3.msra.mxu0 %v6702_v35 }
 0x364   :  { %6129 = vmatpush3.msra.mxu1 %v6723_v44  ;;  %6087 = vmatprep.subr.mxu0 %v6711_v39 }
 0x365   :  { %6130 = vmatprep.subr.mxu1 %v6737_v49  ;;  %6088 = vmatpush3.msra.mxu0 %v6711_v39 }
 0x366   :  { %6131 = vmatpush3.msra.mxu1 %v6737_v49  ;;  %6089 = vmatprep.subr.mxu0 %v6721_v43 }
 0x367   :  { %6132 = vmatprep.subr.mxu1 %v6749_v53  ;;  %6090 = vmatpush3.msra.mxu0 %v6721_v43 }
 0x368   :  { %6133 = vmatpush3.msra.mxu1 %v6749_v53  ;;  %6091 = vmatprep.subr.mxu0 %v6735_v48 }
 0x369   :  { %6134 = vmatprep.subr.mxu1 %v6838_v14  ;;  %6092 = vmatpush3.msra.mxu0 %v6735_v48 }
 0x36a   :  { %6135 = vmatpush3.msra.mxu1 %v6838_v14  ;;  %6093 = vmatprep.subr.mxu0 %v6747_v52 }
 0x36b   :  { %6136 = vmatprep.subr.mxu1 %v6843_v20  ;;  %6094 = vmatpush3.msra.mxu0 %v6747_v52 }
 0x36c   :  { %6137 = vmatpush3.msra.mxu1 %v6843_v20  ;;  %6095 = vmatprep.subr.mxu0 %v6761_v57 }
 0x36d   :  { %6138 = vmatprep.subr.mxu1 %v6853_v26  ;;  %6096 = vmatpush3.msra.mxu0 %v6761_v57 }
 0x36e   :  { %6139 = vmatpush3.msra.mxu1 %v6853_v26  ;;  %6097 = vmatprep.subr.mxu0 %v6775_v61 }
 0x36f   :  { %6140 = vmatprep.subr.mxu1 %v6865_v37  ;;  %6098 = vmatpush3.msra.mxu0 %v6775_v61 }
 0x370   :  { %6141 = vmatpush3.msra.mxu1 %v6865_v37  ;;  %6099 = vmatprep.subr.mxu0 %v6841_v17 }
 0x371   :  { %6142 = vmatprep.subr.mxu1 %v6880_v59  ;;  %6100 = vmatpush3.msra.mxu0 %v6841_v17 }
 0x372   :  { %6143 = vmatpush3.msra.mxu1 %v6880_v59  ;;  %6101 = vmatprep.subr.mxu0 %v6851_v24 }
 0x373   :  { %6144 = vmatprep.subr.mxu1 %v6891_v12  ;;  %6102 = vmatpush3.msra.mxu0 %v6851_v24 }
 0x374   :  { %6145 = vmatpush3.msra.mxu1 %v6891_v12  ;;  %6103 = vmatprep.subr.mxu0 %v6863_v34 }
 0x375   :  { %6146 = vmatprep.subr.mxu1 %v6906_v11  ;;  %6104 = vmatpush3.msra.mxu0 %v6863_v34 }
 0x376   :  { %6147 = vmatpush3.msra.mxu1 %v6906_v11  ;;  %6105 = vmatprep.subr.mxu0 %v6877_v55 }
 0x377   :  { %6148 = vmatprep.subr.mxu1 %v6923_v6  ;;  %6106 = vmatpush3.msra.mxu0 %v6877_v55 }
 0x378   :  { %6149 = vmatpush3.msra.mxu1 %v6923_v6  ;;  %6107 = vmatprep.subr.mxu0 %v6895_v16 }
 0x379   :  { %6151 = vmatmul.mubr.f32.vlgmr.msra.gmra.mxu1 %v3079_v50  ;;  %6188 = vmatprep.subr.mxu1 %v6680_v19  ;;  %v8156_v50 = vld [vmem:[#allocation33_spill] sm:$0xff] }
 0x37a   :  { %6108 = vmatpush3.msra.mxu0 %v6895_v16  ;;  %6189 = vmatpush3.msra.mxu1 %v6680_v19 }
 0x37b   :  { %6220 = vmatprep.mubr.f32.mxu1 %v7501_v13  ;;  %6109 = vmatprep.subr.mxu0 %v6904_v46 }
 0x37c   :  { %6190 = vmatprep.subr.mxu1 %v6687_v25  ;;  %6110 = vmatpush3.msra.mxu0 %v6904_v46 }
 0x37d   :  { %6191 = vmatpush3.msra.mxu1 %v6687_v25  ;;  %6111 = vmatprep.subr.mxu0 %v6921_v63 }
 0x37e   :  { %6192 = vmatprep.subr.mxu1 %v6696_v32  ;;  %6112 = vmatpush3.msra.mxu0 %v6921_v63 }
 0x37f   :  { %6193 = vmatpush3.msra.mxu1 %v6696_v32  ;;  %6113 = vmatprep.subr.mxu0 %v6937_v22 }
 0x380   :  { %6194 = vmatprep.subr.mxu1 %v6704_v36  ;;  %6114 = vmatpush3.msra.mxu0 %v6937_v22 }
 0x381   :  { %6195 = vmatpush3.msra.mxu1 %v6704_v36  ;;  %6116 = vmatmul.mubr.f32.vlgmr.msra.gmra.mxu0 %v7499_v0  ;;  %v3792_v0 = vand.u32 4294901760, %v3791_v1 }
 0x382   :  { %6153 = vmatprep.subr.mxu0 %v6708_v38  ;;  %6196 = vmatprep.subr.mxu1 %v6713_v40 }
 0x383   :  { %6154 = vmatpush3.msra.mxu0 %v6708_v38  ;;  %6185 = vmatprep.mubr.f32.mxu0 %v7501_v13  ;;  %v7606_v13 = vand.u32 4294901760, %v3672_v23  ;;  %v3793_v54 = vsub.f32 %v3791_v1, %v3792_v0 }
 0x384   :  { %6197 = vmatpush3.msra.mxu1 %v6713_v40  ;;  %6155 = vmatprep.subr.mxu0 %v6718_v42 }
 0x385   :  { %6198 = vmatprep.subr.mxu1 %v6723_v44  ;;  %6156 = vmatpush3.msra.mxu0 %v6718_v42  ;;  %v3798_v33 = vsub.f32 %v3672_v23, %v7606_v13  ;;  %v3794_v18 = vand.u32 4294901760, %v3793_v54  ;;  %v8163_v23 = vld [vmem:[#allocation46_spill] sm:$0xff]  ;;  %v8164_v54 = vld [vmem:[#allocation15_spill] sm:$0xff] }
 0x386   :  { %6199 = vmatpush3.msra.mxu1 %v6723_v44  ;;  %6157 = vmatprep.subr.mxu0 %v6732_v47 }
 0x387   :  { %6200 = vmatprep.subr.mxu1 %v6737_v49  ;;  %6158 = vmatpush3.msra.mxu0 %v6732_v47  ;;  %v3799_v29 = vand.u32 4294901760, %v3798_v33 }
 0x388   :  { %6201 = vmatpush3.msra.mxu1 %v6737_v49  ;;  %6159 = vmatprep.subr.mxu0 %v6744_v51 }
 0x389   :  { %6202 = vmatprep.subr.mxu1 %v6749_v53  ;;  %6160 = vmatpush3.msra.mxu0 %v6744_v51  ;;  %v3800_v5 = vsub.f32 %v3798_v33, %v3799_v29 }
 0x38a   :  { %6203 = vmatpush3.msra.mxu1 %v6749_v53  ;;  %6161 = vmatprep.subr.mxu0 %v6758_v56 }
 0x38b   :  { %6204 = vmatprep.subr.mxu1 %v6838_v14  ;;  %6162 = vmatpush3.msra.mxu0 %v6758_v56  ;;  %v3801_v7 = vand.u32 4294901760, %v3800_v5  ;;  %v8165_v5 = vld [vmem:[#allocation16_spill] sm:$0xff] }
 0x38c   :  { %6205 = vmatpush3.msra.mxu1 %v6838_v14  ;;  %6163 = vmatprep.subr.mxu0 %v6772_v60 }
 0x38d   :  { %6206 = vmatprep.subr.mxu1 %v6843_v20  ;;  %6164 = vmatpush3.msra.mxu0 %v6772_v60 }
 0x38e   :  { %6207 = vmatpush3.msra.mxu1 %v6843_v20  ;;  %6165 = vmatprep.subr.mxu0 %v8154_v9 }
 0x38f   :  { %6208 = vmatprep.subr.mxu1 %v6853_v26  ;;  %6166 = vmatpush3.msra.mxu0 %v8154_v9 }
 0x390   :  { %6209 = vmatpush3.msra.mxu1 %v6853_v26  ;;  %6167 = vmatprep.subr.mxu0 %v8155_v41 }
 0x391   :  { %6210 = vmatprep.subr.mxu1 %v6865_v37  ;;  %6168 = vmatpush3.msra.mxu0 %v8155_v41 }
 0x392   :  { %6211 = vmatpush3.msra.mxu1 %v6865_v37  ;;  %6169 = vmatprep.subr.mxu0 %v8156_v50 }
 0x393   :  { %6212 = vmatprep.subr.mxu1 %v6880_v59  ;;  %6170 = vmatpush3.msra.mxu0 %v8156_v50 }
 0x394   :  { %6213 = vmatpush3.msra.mxu1 %v6880_v59  ;;  %6171 = vmatprep.subr.mxu0 %v8157_v30 }
 0x395   :  { %6214 = vmatprep.subr.mxu1 %v6891_v12  ;;  %6172 = vmatpush3.msra.mxu0 %v8157_v30 }
 0x396   :  { %6215 = vmatpush3.msra.mxu1 %v6891_v12  ;;  %6173 = vmatprep.subr.mxu0 %v8158_v10 }
 0x397   :  { %6216 = vmatprep.subr.mxu1 %v6906_v11  ;;  %6174 = vmatpush3.msra.mxu0 %v8158_v10 }
 0x398   :  { %6217 = vmatpush3.msra.mxu1 %v6906_v11  ;;  %6175 = vmatprep.subr.mxu0 %v8159_v8 }
 0x399   :  { %6218 = vmatprep.subr.mxu1 %v6923_v6  ;;  %6176 = vmatpush3.msra.mxu0 %v8159_v8 }
 0x39a   :  { %6219 = vmatpush3.msra.mxu1 %v6923_v6  ;;  %6177 = vmatprep.subr.mxu0 %v8160_v62 }
 0x39b   :  { %6221 = vmatmul.mubr.f32.vlgmr.msra.gmra.mxu1 %v7496_v2  ;;  %6178 = vmatpush3.msra.mxu0 %v8160_v62 }
 0x39c   :  { %6179 = vmatprep.subr.mxu0 %v8161_v15  ;;  %6230 = vmatprep.subr.mxu1 %v3794_v18 }
 0x39d   :  { %6180 = vmatpush3.msra.mxu0 %v8161_v15  ;;  %6231 = vmatpush3.msra.mxu1 %v3794_v18  ;;  %v8166_v18 = vld [vmem:[#allocation21_spill] sm:$0xff] }
 0x39e   :  { %6181 = vmatprep.subr.mxu0 %v8162_v28  ;;  %6232 = vmatprep.subr.mxu1 %v3801_v7 }
 0x39f   :  { %6182 = vmatpush3.msra.mxu0 %v8162_v28  ;;  %6233 = vmatpush3.msra.mxu1 %v3801_v7  ;;  %v8167_v7 = vld [vmem:[#allocation22_spill] sm:$0xff] }
 0x3a0   :  { %6183 = vmatprep.subr.mxu0 %v8163_v23  ;;  %6234 = vmatprep.mubr.f32.mxu1 %v8164_v54 }
 0x3a1   :  { %6184 = vmatpush3.msra.mxu0 %v8163_v23  ;;  %6235 = vmatmul.mubr.f32.vlgmr.msra.gmra.mxu1 %v8165_v5 }
 0x3a2   :  { %6186 = vmatmul.mubr.f32.vlgmr.msra.gmra.mxu0 %v7496_v2  ;;  %6223 = vmatprep.subr.mxu0 %v7600_v21  ;;  %v8169_v2 = vld [vmem:[#allocation18_spill] sm:$0xff] }
 0x3a3   :  { %6224 = vmatpush3.msra.mxu0 %v7600_v21  ;;  %6227 = vmatprep.mubr.f32.mxu0 %v8166_v18  ;;  %v8170_v18 = vld [vmem:[#allocation19_spill] sm:$0xff] }
 0x3a4   :  { %6225 = vmatprep.subr.mxu0 %v7606_v13  ;;  %6244 = vmatprep.subr.mxu1 %v7600_v21 }
 0x3a5   :  { %6226 = vmatpush3.msra.mxu0 %v7606_v13  ;;  %6245 = vmatpush3.msra.mxu1 %v7600_v21 }
 0x3a6   :  { %6228 = vmatmul.mubr.f32.vlgmr.msra.gmra.mxu0 %v8167_v7  ;;  %6237 = vmatprep.subr.mxu0 %v3791_v1  ;;  %v8182_v7 = vld [vmem:[#allocation39_spill] sm:$0xff] }
 0x3a7   :  { %6238 = vmatpush3.msra.mxu0 %v3791_v1  ;;  %6241 = vmatprep.mubr.f32.mxu0 %v8168_v27  ;;  %v8173_v27 = vld [vmem:[#allocation24_spill] sm:$0xff]  ;;  %v8176_v1 = vld [vmem:[#allocation29_spill] sm:$0xff] }
 0x3a8   :  { %6239 = vmatprep.subr.mxu0 %v3798_v33  ;;  %6246 = vmatprep.subr.mxu1 %v7606_v13 }
 0x3a9   :  { %6240 = vmatpush3.msra.mxu0 %v3798_v33  ;;  %6247 = vmatpush3.msra.mxu1 %v7606_v13  ;;  %v8177_v33 = vld [vmem:[#allocation30_spill] sm:$0xff] }
 0x3aa   :  { %6242 = vmatmul.mubr.f32.vlgmr.msra.gmra.mxu0 %v8169_v2  ;;  %6248 = vmatprep.mubr.f32.mxu1 %v8170_v18  ;;  %v8183_v2 = vld [vmem:[#allocation41_spill] sm:$0xff]  ;;  %v8184_v18 = vld [vmem:[#allocation44_spill] sm:$0xff] }
 0x3ab   :  { %6251 = vmatprep.subr.mxu0 %v3792_v0  ;;  %6249 = vmatmul.mubr.f32.vlgmr.msra.gmra.mxu1 %v8171_v4  ;;  %v8172_v4 = vld [vmem:[#allocation23_spill] sm:$0xff] }
 0x3ac   :  { %6252 = vmatpush3.msra.mxu0 %v3792_v0  ;;  %6258 = vmatprep.subr.mxu1 %v7600_v21  ;;  %v8178_v0 = vld [vmem:[#allocation31_spill] sm:$0xff] }
 0x3ad   :  { %6253 = vmatprep.subr.mxu0 %v3799_v29  ;;  %6259 = vmatpush3.msra.mxu1 %v7600_v21  ;;  %v8174_v21 = vld [vmem:[#allocation25_spill] sm:$0xff] }
 0x3ae   :  { %6254 = vmatpush3.msra.mxu0 %v3799_v29  ;;  %6255 = vmatprep.mubr.f32.mxu0 %v8164_v54  ;;  %v8179_v29 = vld [vmem:[#allocation32_spill] sm:$0xff] }
 0x3af   :  { %6260 = vmatprep.subr.mxu1 %v7606_v13  ;;  %6256 = vmatmul.mubr.f32.vlgmr.msra.gmra.mxu0 %v8165_v5 }
 0x3b0   :  { %6261 = vmatpush3.msra.mxu1 %v7606_v13  ;;  %6262 = vmatprep.mubr.f32.mxu1 %v8164_v54  ;;  %v8175_v13 = vld [vmem:[#allocation27_spill] sm:$0xff] }
 0x3b1   :  { %6263 = vmatmul.mubr.f32.vlgmr.msra.gmra.mxu1 %v8165_v5  ;;  %6300 = vmatprep.subr.mxu1 %v8172_v4  ;;  %v8180_v54 = vld [vmem:[#allocation35_spill] sm:$0xff]  ;;  %v8181_v5 = vld [vmem:[#allocation37_spill] sm:$0xff] }
 0x3b2   :  { %6301 = vmatpush3.msra.mxu1 %v8172_v4  ;;  %6265 = vmatprep.subr.mxu0 %v6680_v19  ;;  %v8185_v4 = vld [vmem:[#allocation45_spill] sm:$0xff] }
 0x3b3   :  { %6302 = vmatprep.subr.mxu1 %v8173_v27  ;;  %6266 = vmatpush3.msra.mxu0 %v6680_v19 }
 0x3b4   :  { %6303 = vmatpush3.msra.mxu1 %v8173_v27  ;;  %6267 = vmatprep.subr.mxu0 %v6687_v25  ;;  %v8186_v27 = vld [vmem:[#allocation47_spill] sm:$0xff] }
 0x3b5   :  { %6304 = vmatprep.subr.mxu1 %v8174_v21  ;;  %6268 = vmatpush3.msra.mxu0 %v6687_v25 }
 0x3b6   :  { %6305 = vmatpush3.msra.mxu1 %v8174_v21  ;;  %6269 = vmatprep.subr.mxu0 %v6696_v32  ;;  %v8187_v21 = vld [vmem:[#allocation48_spill] sm:$0xff] }
 0x3b7   :  { %6306 = vmatprep.subr.mxu1 %v8175_v13  ;;  %6270 = vmatpush3.msra.mxu0 %v6696_v32 }
 0x3b8   :  { %6307 = vmatpush3.msra.mxu1 %v8175_v13  ;;  %6271 = vmatprep.subr.mxu0 %v6704_v36 }
 0x3b9   :  { %6308 = vmatprep.subr.mxu1 %v8176_v1  ;;  %6272 = vmatpush3.msra.mxu0 %v6704_v36 }
 0x3ba   :  { %6309 = vmatpush3.msra.mxu1 %v8176_v1  ;;  %6273 = vmatprep.subr.mxu0 %v6713_v40 }
 0x3bb   :  { %6310 = vmatprep.subr.mxu1 %v8177_v33  ;;  %6274 = vmatpush3.msra.mxu0 %v6713_v40 }
 0x3bc   :  { %6311 = vmatpush3.msra.mxu1 %v8177_v33  ;;  %6275 = vmatprep.subr.mxu0 %v6723_v44 }
 0x3bd   :  { %6312 = vmatprep.subr.mxu1 %v8178_v0  ;;  %6276 = vmatpush3.msra.mxu0 %v6723_v44 }
 0x3be   :  { %6313 = vmatpush3.msra.mxu1 %v8178_v0  ;;  %6277 = vmatprep.subr.mxu0 %v6737_v49 }
 0x3bf   :  { %6314 = vmatprep.subr.mxu1 %v8179_v29  ;;  %6278 = vmatpush3.msra.mxu0 %v6737_v49 }
 0x3c0   :  { %6315 = vmatpush3.msra.mxu1 %v8179_v29  ;;  %6279 = vmatprep.subr.mxu0 %v6749_v53 }
 0x3c1   :  { %6316 = vmatprep.subr.mxu1 %v8180_v54  ;;  %6280 = vmatpush3.msra.mxu0 %v6749_v53 }
 0x3c2   :  { %6317 = vmatpush3.msra.mxu1 %v8180_v54  ;;  %6281 = vmatprep.subr.mxu0 %v6838_v14 }
 0x3c3   :  { %6318 = vmatprep.subr.mxu1 %v8181_v5  ;;  %6282 = vmatpush3.msra.mxu0 %v6838_v14 }
 0x3c4   :  { %6319 = vmatpush3.msra.mxu1 %v8181_v5  ;;  %6283 = vmatprep.subr.mxu0 %v6843_v20 }
 0x3c5   :  { %6320 = vmatprep.subr.mxu1 %v8182_v7  ;;  %6284 = vmatpush3.msra.mxu0 %v6843_v20 }
 0x3c6   :  { %6321 = vmatpush3.msra.mxu1 %v8182_v7  ;;  %6285 = vmatprep.subr.mxu0 %v6853_v26 }
 0x3c7   :  { %6322 = vmatprep.subr.mxu1 %v8183_v2  ;;  %6286 = vmatpush3.msra.mxu0 %v6853_v26 }
 0x3c8   :  { %6323 = vmatpush3.msra.mxu1 %v8183_v2  ;;  %6287 = vmatprep.subr.mxu0 %v6865_v37 }
 0x3c9   :  { %6324 = vmatprep.subr.mxu1 %v8184_v18  ;;  %6288 = vmatpush3.msra.mxu0 %v6865_v37 }
 0x3ca   :  { %6325 = vmatpush3.msra.mxu1 %v8184_v18  ;;  %6289 = vmatprep.subr.mxu0 %v6880_v59 }
 0x3cb   :  { %6326 = vmatprep.subr.mxu1 %v8185_v4  ;;  %6290 = vmatpush3.msra.mxu0 %v6880_v59 }
 0x3cc   :  { %6327 = vmatpush3.msra.mxu1 %v8185_v4  ;;  %6291 = vmatprep.subr.mxu0 %v6891_v12 }
 0x3cd   :  { %6328 = vmatprep.subr.mxu1 %v8186_v27  ;;  %6292 = vmatpush3.msra.mxu0 %v6891_v12 }
 0x3ce   :  { %6329 = vmatpush3.msra.mxu1 %v8186_v27  ;;  %6293 = vmatprep.subr.mxu0 %v6906_v11 }
 0x3cf   :  { %6330 = vmatprep.subr.mxu1 %v8187_v21  ;;  %6294 = vmatpush3.msra.mxu0 %v6906_v11 }
 0x3d0   :  { %6331 = vmatpush3.msra.mxu1 %v8187_v21  ;;  %6295 = vmatprep.subr.mxu0 %v6923_v6 }
 0x3d1   :  { %6370 = vmatprep.subr.mxu1 %v6680_v19  ;;  %6296 = vmatpush3.msra.mxu0 %v6923_v6 }
 0x3d2   :  { %6335 = vmatprep.subr.mxu0 %v6694_v31 }
 0x418   :  { %v6082_v13 = vpop.f32.mrf.mxu1 }
 0x41a   :  { %v3234_v0 = vpop.f32.mrf.mxu1 }
 0x420   :  { %v6047_v1 = vpop.f32.mrf.mxu0 }
 0x421   :  { %v3241_v33 = vadd.f32 %v6082_v13, %v6047_v1 }
 0x422   :  { %v3073_v29 = vpop.f32.mrf.mxu0 }
 0x423   :  { %v3235_v54 = vadd.f32 %v3234_v0, %v3073_v29 }
 0x439   :  { %v6152_v5 = vpop.f32.mrf.mxu1 }
 0x43b   :  { %v3440_v21 = vpop.f32.mrf.mxu1 }
 0x441   :  { %v6117_v7 = vpop.f32.mrf.mxu0 }
 0x442   :  { %v3352_v2 = vadd.f32 %v6117_v7, %v3241_v33 }
 0x443   :  { %v3344_v18 = vpop.f32.mrf.mxu0 }
 0x444   :  { %v3345_v4 = vadd.f32 %v3344_v18, %v3235_v54  ;;  %v3449_v27 = vadd.f32 %v6152_v5, %v3352_v2 }
 0x446   :  { %v3441_v3 = vadd.f32 %v3440_v21, %v3345_v4 }
 0x45b   :  { %v6222_v45 = vpop.f32.mrf.mxu1 }
 0x45d   :  { %v3660_v58 = vpop.f32.mrf.mxu1 }
 0x461   :  { %v6236_v15 = vpop.f32.mrf.mxu1 }
 0x462   :  { %v6187_v23 = vpop.f32.mrf.mxu0 }
 0x463   :  { %v3574_v28 = vadd.f32 %v6187_v23, %v3449_v27  ;;  %v3838_v0 = vpop.f32.mrf.mxu1 }
 0x464   :  { %v3567_v62 = vpop.f32.mrf.mxu0 }
 0x465   :  { %v7741_v8 = vadd.f32 %v6222_v45, %v3574_v28  ;;  %v3568_v13 = vadd.f32 %v3567_v62, %v3441_v3 }
 0x466   :  { %v6229_v1 = vpop.f32.mrf.mxu0 }
 0x467   :  { %v7743_v10 = vadd.f32 %v3660_v58, %v3568_v13  ;;  %v3845_v33 = vadd.f32 %v6236_v15, %v6229_v1 }
 0x468   :  { %v3747_v29 = vpop.f32.mrf.mxu0 }
 0x469   :  { %8188 = vst [vmem:[#allocation26_spill] sm:$0xff] %v7743_v10  ;;  %v3839_v54 = vadd.f32 %v3838_v0, %v3747_v29 }
 0x46a   :  { %v6243_v7 = vpop.f32.mrf.mxu0 }
 0x46b   :  { %v3928_v5 = vadd.f32 %v6243_v7, %v3845_v33  ;;  %v6250_v2 = vpop.f32.mrf.mxu1 }
 0x46c   :  { %v3920_v18 = vpop.f32.mrf.mxu0 }
 0x46d   :  { %v4011_v4 = vadd.f32 %v6250_v2, %v3928_v5  ;;  %v3921_v21 = vadd.f32 %v3920_v18, %v3839_v54  ;;  %v4002_v30 = vpop.f32.mrf.mxu1  ;;  %v8198_v5 = vld [vmem:[#allocation50_spill] sm:$0xff]  ;;  %v8199_v18 = vld [vmem:[#allocation49_spill] sm:$0xff] }
 0x46e   :  { %v4883_v2 = vmul.f32 2.0, %v8198_v5 }
 0x46f   :  { %v4003_v23 = vadd.f32 %v4002_v30, %v3921_v21  ;;  %v6257_v27 = vpop.f32.mrf.mxu0 }
 0x470   :  { %v4094_v50 = vadd.f32 %v6257_v27, %v4011_v4 }
 0x471   :  { %v6264_v45 = vpop.f32.mrf.mxu1  ;;  %v4087_v28 = vpop.f32.mrf.mxu0 }
 0x472   :  { %v4173_v3 = vadd.f32 %v6264_v45, %v4094_v50  ;;  %v4088_v62 = vadd.f32 %v4087_v28, %v4003_v23  ;;  %v8201_v28 = vld [vmem:[#allocation51_spill] sm:$0xff] }
 0x473   :  { %v4166_v58 = vpop.f32.mrf.mxu1 }
 0x474   :  { %v7745_v13 = vand.u32 4294901760, %v4173_v3  ;;  %v4167_v10 = vadd.f32 %v4166_v58, %v4088_v62  ;;  %v8202_v62 = vld [vmem:[#allocation52_spill] sm:$0xff] }
 0x476   :  { %v7748_v15 = vsub.f32 %v4173_v3, %v7745_v13  ;;  %v7750_v1 = vand.u32 4294901760, %v4167_v10 }
 0x478   :  { %v4269_v0 = vand.u32 4294901760, %v7748_v15  ;;  %v4258_v29 = vsub.f32 %v4167_v10, %v7750_v1  ;;  %6332 = vmatprep.mubr.f32.mxu1 %v7750_v1 }
 0x479   :  { %6333 = vmatmul.mubr.f32.vlgmr.msra.gmra.mxu1 %v7745_v13 }
 0x47a   :  { %6371 = vmatpush3.msra.mxu1 %v6680_v19  ;;  %v4259_v50 = vand.u32 4294901760, %v4258_v29  ;;  %v4270_v30 = vsub.f32 %v7748_v15, %v4269_v0 }
 0x47b   :  { %6372 = vmatprep.subr.mxu1 %v6687_v25 }
 0x47c   :  { %6373 = vmatpush3.msra.mxu1 %v6687_v25  ;;  %6402 = vmatprep.mubr.f32.mxu1 %v4259_v50  ;;  %v4260_v33 = vsub.f32 %v4258_v29, %v4259_v50  ;;  %v4271_v7 = vand.u32 4294901760, %v4270_v30  ;;  %v8204_v30 = vld [vmem:[#allocation55_spill] sm:$0xff] }
 0x47d   :  { %6374 = vmatprep.subr.mxu1 %v6696_v32 }
 0x47e   :  { %6375 = vmatpush3.msra.mxu1 %v6696_v32  ;;  %v4261_v10 = vand.u32 4294901760, %v4260_v33 }
 0x47f   :  { %6376 = vmatprep.subr.mxu1 %v6704_v36 }
 0x480   :  { %6377 = vmatpush3.msra.mxu1 %v6704_v36  ;;  %6297 = vmatprep.mubr.f32.mxu0 %v4261_v10 }
 0x481   :  { %6378 = vmatprep.subr.mxu1 %v6713_v40  ;;  %6298 = vmatmul.mubr.f32.vlgmr.msra.gmra.mxu0 %v4271_v7 }
 0x482   :  { %6336 = vmatpush3.msra.mxu0 %v6694_v31  ;;  %6379 = vmatpush3.msra.mxu1 %v6713_v40  ;;  %v8191_v31 = vld [vmem:[#allocation36_spill] sm:$0xff] }
 0x483   :  { %6337 = vmatprep.subr.mxu0 %v6702_v35  ;;  %6367 = vmatprep.mubr.f32.mxu0 %v4258_v29  ;;  %v4885_v29 = vadd.f32 0.0001, %v4883_v2 }
 0x484   :  { %6380 = vmatprep.subr.mxu1 %v6723_v44  ;;  %6338 = vmatpush3.msra.mxu0 %v6702_v35  ;;  %v8193_v35 = vld [vmem:[#allocation40_spill] sm:$0xff] }
 0x485   :  { %6381 = vmatpush3.msra.mxu1 %v6723_v44  ;;  %6339 = vmatprep.subr.mxu0 %v6711_v39 }
 0x486   :  { %6382 = vmatprep.subr.mxu1 %v6737_v49  ;;  %6340 = vmatpush3.msra.mxu0 %v6711_v39  ;;  %v8196_v39 = vld [vmem:[#allocation46_spill] sm:$0xff] }
 0x487   :  { %6383 = vmatpush3.msra.mxu1 %v6737_v49  ;;  %6341 = vmatprep.subr.mxu0 %v6721_v43 }
 0x488   :  { %6384 = vmatprep.subr.mxu1 %v6749_v53  ;;  %6342 = vmatpush3.msra.mxu0 %v6721_v43 }
 0x489   :  { %6385 = vmatpush3.msra.mxu1 %v6749_v53  ;;  %6343 = vmatprep.subr.mxu0 %v6735_v48 }
 0x48a   :  { %6386 = vmatprep.subr.mxu1 %v6838_v14  ;;  %6344 = vmatpush3.msra.mxu0 %v6735_v48 }
 0x48b   :  { %6387 = vmatpush3.msra.mxu1 %v6838_v14  ;;  %6345 = vmatprep.subr.mxu0 %v6747_v52 }
 0x48c   :  { %6388 = vmatprep.subr.mxu1 %v6843_v20  ;;  %6346 = vmatpush3.msra.mxu0 %v6747_v52 }
 0x48d   :  { %6389 = vmatpush3.msra.mxu1 %v6843_v20  ;;  %6347 = vmatprep.subr.mxu0 %v6761_v57 }
 0x48e   :  { %6390 = vmatprep.subr.mxu1 %v6853_v26  ;;  %6348 = vmatpush3.msra.mxu0 %v6761_v57 }
 0x48f   :  { %6391 = vmatpush3.msra.mxu1 %v6853_v26  ;;  %6349 = vmatprep.subr.mxu0 %v6775_v61 }
 0x490   :  { %6392 = vmatprep.subr.mxu1 %v6865_v37  ;;  %6350 = vmatpush3.msra.mxu0 %v6775_v61 }
 0x491   :  { %6393 = vmatpush3.msra.mxu1 %v6865_v37  ;;  %6351 = vmatprep.subr.mxu0 %v6841_v17 }
 0x492   :  { %6394 = vmatprep.subr.mxu1 %v6880_v59  ;;  %6352 = vmatpush3.msra.mxu0 %v6841_v17 }
 0x493   :  { %6395 = vmatpush3.msra.mxu1 %v6880_v59  ;;  %6353 = vmatprep.subr.mxu0 %v6851_v24 }
 0x494   :  { %6396 = vmatprep.subr.mxu1 %v6891_v12  ;;  %6354 = vmatpush3.msra.mxu0 %v6851_v24 }
 0x495   :  { %6397 = vmatpush3.msra.mxu1 %v6891_v12  ;;  %6355 = vmatprep.subr.mxu0 %v6863_v34 }
 0x496   :  { %6398 = vmatprep.subr.mxu1 %v6906_v11  ;;  %6356 = vmatpush3.msra.mxu0 %v6863_v34  ;;  %v3671_v34 = vmul.f32 0.008264462, %v7741_v8  ;;  %v8200_v8 = vld [vmem:[#allocation54_spill] sm:$0xff] }
 0x497   :  { %6399 = vmatpush3.msra.mxu1 %v6906_v11  ;;  %6357 = vmatprep.subr.mxu0 %v6877_v55  ;;  %v4882_v45 = vmul.f32 2.0, %v8200_v8 }
 0x498   :  { %6400 = vmatprep.subr.mxu1 %v6923_v6  ;;  %6358 = vmatpush3.msra.mxu0 %v6877_v55 }
 0x499   :  { %6401 = vmatpush3.msra.mxu1 %v6923_v6  ;;  %6359 = vmatprep.subr.mxu0 %v6895_v16 }
 0x49a   :  { %6403 = vmatmul.mubr.f32.vlgmr.msra.gmra.mxu1 %v4269_v0  ;;  %6440 = vmatprep.subr.mxu1 %v6680_v19 }
 0x49b   :  { %6360 = vmatpush3.msra.mxu0 %v6895_v16  ;;  %6441 = vmatpush3.msra.mxu1 %v6680_v19  ;;  %v8189_v19 = vld [vmem:[#allocation33_spill] sm:$0xff] }
 0x49c   :  { %6472 = vmatprep.mubr.f32.mxu1 %v7750_v1  ;;  %6361 = vmatprep.subr.mxu0 %v6904_v46 }
 0x49d   :  { %6442 = vmatprep.subr.mxu1 %v6687_v25  ;;  %6362 = vmatpush3.msra.mxu0 %v6904_v46 }
 0x49e   :  { %6443 = vmatpush3.msra.mxu1 %v6687_v25  ;;  %6363 = vmatprep.subr.mxu0 %v6921_v63  ;;  %v8190_v25 = vld [vmem:[#allocation34_spill] sm:$0xff] }
 0x49f   :  { %6444 = vmatprep.subr.mxu1 %v6696_v32  ;;  %6364 = vmatpush3.msra.mxu0 %v6921_v63 }
 0x4a0   :  { %6445 = vmatpush3.msra.mxu1 %v6696_v32  ;;  %6365 = vmatprep.subr.mxu0 %v6937_v22  ;;  %v8192_v32 = vld [vmem:[#allocation38_spill] sm:$0xff] }
 0x4a1   :  { %6446 = vmatprep.subr.mxu1 %v6704_v36  ;;  %6366 = vmatpush3.msra.mxu0 %v6937_v22 }
 0x4a2   :  { %6447 = vmatpush3.msra.mxu1 %v6704_v36  ;;  %6368 = vmatmul.mubr.f32.vlgmr.msra.gmra.mxu0 %v7748_v15  ;;  %v8194_v36 = vld [vmem:[#allocation42_spill] sm:$0xff] }
 0x4a3   :  { %6405 = vmatprep.subr.mxu0 %v6708_v38  ;;  %6448 = vmatprep.subr.mxu1 %v6713_v40 }
 0x4a4   :  { %6406 = vmatpush3.msra.mxu0 %v6708_v38  ;;  %6437 = vmatprep.mubr.f32.mxu0 %v7750_v1  ;;  %v8195_v38 = vld [vmem:[#allocation43_spill] sm:$0xff]  ;;  %v8203_v1 = vld [vmem:[#allocation53_spill] sm:$0xff] }
 0x4a5   :  { %6449 = vmatpush3.msra.mxu1 %v6713_v40  ;;  %6407 = vmatprep.subr.mxu0 %v6718_v42  ;;  %v4895_v0 = vadd.f32 0.0001, %v8203_v1 }
 0x4a6   :  { %6450 = vmatprep.subr.mxu1 %v6723_v44  ;;  %6408 = vmatpush3.msra.mxu0 %v6718_v42 }
 0x4a7   :  { %6451 = vmatpush3.msra.mxu1 %v6723_v44  ;;  %6409 = vmatprep.subr.mxu0 %v6732_v47 }
 0x4a8   :  { %6452 = vmatprep.subr.mxu1 %v6737_v49  ;;  %6410 = vmatpush3.msra.mxu0 %v6732_v47 }
 0x4a9   :  { %6453 = vmatpush3.msra.mxu1 %v6737_v49  ;;  %6411 = vmatprep.subr.mxu0 %v6744_v51 }
 0x4aa   :  { %6454 = vmatprep.subr.mxu1 %v6749_v53  ;;  %6412 = vmatpush3.msra.mxu0 %v6744_v51 }
 0x4ab   :  { %6455 = vmatpush3.msra.mxu1 %v6749_v53  ;;  %6413 = vmatprep.subr.mxu0 %v6758_v56 }
 0x4ac   :  { %6456 = vmatprep.subr.mxu1 %v6838_v14  ;;  %6414 = vmatpush3.msra.mxu0 %v6758_v56 }
 0x4ad   :  { %6457 = vmatpush3.msra.mxu1 %v6838_v14  ;;  %6415 = vmatprep.subr.mxu0 %v6772_v60 }
 0x4ae   :  { %6458 = vmatprep.subr.mxu1 %v6843_v20  ;;  %6416 = vmatpush3.msra.mxu0 %v6772_v60 }
 0x4af   :  { %6459 = vmatpush3.msra.mxu1 %v6843_v20  ;;  %6417 = vmatprep.subr.mxu0 %v8154_v9 }
 0x4b0   :  { %6460 = vmatprep.subr.mxu1 %v6853_v26  ;;  %6418 = vmatpush3.msra.mxu0 %v8154_v9 }
 0x4b1   :  { %6461 = vmatpush3.msra.mxu1 %v6853_v26  ;;  %6419 = vmatprep.subr.mxu0 %v8155_v41 }
 0x4b2   :  { %6462 = vmatprep.subr.mxu1 %v6865_v37  ;;  %6420 = vmatpush3.msra.mxu0 %v8155_v41 }
 0x4b3   :  { %6463 = vmatpush3.msra.mxu1 %v6865_v37  ;;  %6421 = vmatprep.subr.mxu0 %v8189_v19 }
 0x4b4   :  { %6464 = vmatprep.subr.mxu1 %v6880_v59  ;;  %6422 = vmatpush3.msra.mxu0 %v8189_v19  ;;  %v8205_v19 = vld [vmem:[#allocation56_spill] sm:$0xff] }
 0x4b5   :  { %6465 = vmatpush3.msra.mxu1 %v6880_v59  ;;  %6423 = vmatprep.subr.mxu0 %v8190_v25  ;;  %v8197_v59 = vld [vmem:[#allocation26_spill] sm:$0xff] }
 0x4b6   :  { %6466 = vmatprep.subr.mxu1 %v6891_v12  ;;  %6424 = vmatpush3.msra.mxu0 %v8190_v25  ;;  %v4894_v25 = vadd.f32 0.0001, %v8205_v19 }
 0x4b7   :  { %6467 = vmatpush3.msra.mxu1 %v6891_v12  ;;  %6425 = vmatprep.subr.mxu0 %v8191_v31  ;;  %v3670_v12 = vmul.f32 0.008264462, %v8197_v59 }
 0x4b8   :  { %6468 = vmatprep.subr.mxu1 %v6906_v11  ;;  %6426 = vmatpush3.msra.mxu0 %v8191_v31  ;;  %v4884_v31 = vadd.f32 0.0001, %v4882_v45 }
 0x4b9   :  { %6469 = vmatpush3.msra.mxu1 %v6906_v11  ;;  %6427 = vmatprep.subr.mxu0 %v8192_v32 }
 0x4ba   :  { %6470 = vmatprep.subr.mxu1 %v6923_v6  ;;  %6428 = vmatpush3.msra.mxu0 %v8192_v32 }
 0x4bb   :  { %6471 = vmatpush3.msra.mxu1 %v6923_v6  ;;  %6429 = vmatprep.subr.mxu0 %v8193_v35 }
 0x4bc   :  { %6473 = vmatmul.mubr.f32.vlgmr.msra.gmra.mxu1 %v7745_v13  ;;  %6430 = vmatpush3.msra.mxu0 %v8193_v35 }
 0x4bd   :  { %6431 = vmatprep.subr.mxu0 %v8194_v36 }
 0x4be   :  { %6432 = vmatpush3.msra.mxu0 %v8194_v36 }
 0x4bf   :  { %6433 = vmatprep.subr.mxu0 %v8195_v38 }
 0x4c0   :  { %6434 = vmatpush3.msra.mxu0 %v8195_v38 }
 0x4c1   :  { %6435 = vmatprep.subr.mxu0 %v8196_v39 }
 0x4c2   :  { %6436 = vmatpush3.msra.mxu0 %v8196_v39 }
 0x4c3   :  { %6438 = vmatmul.mubr.f32.vlgmr.msra.gmra.mxu0 %v7745_v13 }
 0x539   :  { %v6334_v42 = vpop.f32.mrf.mxu1 }
 0x53b   :  { %v4424_v47 = vpop.f32.mrf.mxu1 }
 0x541   :  { %v6299_v40 = vpop.f32.mrf.mxu0 }
 0x542   :  { %v4431_v48 = vadd.f32 %v6334_v42, %v6299_v40 }
 0x543   :  { %v4263_v43 = vpop.f32.mrf.mxu0 }
 0x544   :  { %v4425_v52 = vadd.f32 %v4424_v47, %v4263_v43 }
 0x55a   :  { %v6404_v49 = vpop.f32.mrf.mxu1 }
 0x55c   :  { %v4630_v57 = vpop.f32.mrf.mxu1 }
 0x562   :  { %v6369_v44 = vpop.f32.mrf.mxu0 }
 0x563   :  { %v4542_v53 = vadd.f32 %v6369_v44, %v4431_v48 }
 0x564   :  { %v4534_v51 = vpop.f32.mrf.mxu0 }
 0x565   :  { %v4535_v56 = vadd.f32 %v4534_v51, %v4425_v52  ;;  %v4639_v60 = vadd.f32 %v6404_v49, %v4542_v53 }
 0x567   :  { %v4631_v14 = vadd.f32 %v4630_v57, %v4535_v56 }
 0x57c   :  { %v6474_v61 = vpop.f32.mrf.mxu1 }
 0x57e   :  { %v4850_v26 = vpop.f32.mrf.mxu1 }
 0x583   :  { %v6439_v6 = vpop.f32.mrf.mxu0 }
 0x584   :  { %v4764_v11 = vadd.f32 %v6439_v6, %v4639_v60 }
 0x585   :  { %v4757_v17 = vpop.f32.mrf.mxu0 }
 0x586   :  { %v4857_v20 = vadd.f32 %v6474_v61, %v4764_v11  ;;  %v4758_v24 = vadd.f32 %v4757_v17, %v4631_v14 }
 0x588   :  { %v4861_v37 = vmul.f32 0.008264462, %v4857_v20  ;;  %v4851_v55 = vadd.f32 %v4850_v26, %v4758_v24 }
 0x58a   :  { %v4869_v16 = vsub.f32 %v3671_v34, %v4861_v37  ;;  %v4875_v46 = vadd.f32 %v4861_v37, %v3671_v34  ;;  %v4860_v63 = vmul.f32 0.008264462, %v4851_v55 }
 0x58c   :  { %v4871_v22 = vmul.f32 0.25, %v4869_v16  ;;  %v4877_v9 = vmul.f32 0.5, %v4875_v46  ;;  %v4868_v41 = vsub.f32 %v3670_v12, %v4860_v63  ;;  %v4874_v54 = vadd.f32 %v4860_v63, %v3670_v12 }
 0x58e   :  { %v4879_v4 = vsub.f32 %v4877_v9, %v8199_v18  ;;  %v4870_v21 = vmul.f32 0.25, %v4868_v41  ;;  %v4876_v23 = vmul.f32 0.5, %v4874_v54  ;;  %v4873_v27 = vsub.f32 %v4871_v22, %v8198_v5 }
 0x590   :  { %v4881_v3 = vsub.f32 %v4879_v4, %v8201_v28  ;;  %v4878_v58 = vsub.f32 %v4876_v23, %v8202_v62  ;;  %v4872_v13 = vsub.f32 %v4870_v21, %v8200_v8  ;;  %v4887_v15 = vmul.f32 2.0, %v4873_v27 }
 0x592   :  { %v4897_v50 = vadd.f32 0.0009, %v4881_v3  ;;  %v4880_v33 = vsub.f32 %v4878_v58, %v8204_v30  ;;  %v4886_v10 = vmul.f32 2.0, %v4872_v13  ;;  %v4889_v7 = vadd.f32 0.0009, %v4887_v15 }
 0x594   :  { %v4896_v32 = vadd.f32 0.0009, %v4880_v33  ;;  %v4888_v35 = vadd.f32 0.0009, %v4886_v10  ;;  %v4891_v36 = vmul.f32 %v4889_v7, %v4885_v29  ;;  %v4899_v38 = vmul.f32 %v4897_v50, %v4895_v0 }
 0x596   :  { %v4890_v39 = vmul.f32 %v4888_v35, %v4884_v31  ;;  %v4898_v40 = vmul.f32 %v4896_v32, %v4894_v25  ;;  %6484 = vrcp.f32 %v4899_v38 }
 0x598   :  { %6486 = vrcp.f32 %v4898_v40 }
 0x5a3   :  { %v6485_v42 = vpop.eup %6484 }
 0x5a4   :  { %v4903_v43 = vmul.f32 %v6485_v42, %v4899_v38 }
 0x5a5   :  { %v6487_v44 = vpop.eup %6486 }
 0x5a6   :  { %v4902_v47 = vmul.f32 %v6487_v44, %v4898_v40  ;;  %v4905_v48 = vsub.f32 2.0, %v4903_v43 }
 0x5a8   :  { %v4904_v49 = vsub.f32 2.0, %v4902_v47  ;;  %v4907_v51 = vmul.f32 %v6485_v42, %v4905_v48 }
 0x5aa   :  { %v4906_v52 = vmul.f32 %v6487_v44, %v4904_v49  ;;  %v4909_v53 = vmul.f32 %v4907_v51, %v4891_v36 }
 0x5ac   :  { %v4908_v56 = vmul.f32 %v4906_v52, %v4890_v39 }
 0x5ae   :  { %v4910_v57 = vadd.f32 %v4909_v53, %v4908_v56 }
 0x5b0   :  { %4911 = vadd.xlane.f32.xlu0 %v4910_v57 }
 0x639   :  { %v4912_v60 = vpop.xlane.xlu0 %4911 }
 0x63a   :  { %v4913_v61 = vrot.slane %v4912_v60, 4 }
 0x63c   :  { %v4914_v6 = vadd.f32 %v4913_v61, %v4912_v60 }
 0x63e   :  { %v4915_v11 = vrot.slane %v4914_v6, 2 }
 0x640   :  { %v4916_v14 = vadd.f32 %v4915_v11, %v4914_v6 }
 0x642   :  { %v4917_v17 = vrot.slane %v4916_v14, 1 }
 0x644   :  { %v4918_v20 = vadd.f32 %v4917_v17, %v4916_v14 }
 0x646   :  { %6475 = vpush %v4918_v20 }
 0x677   :  { %s6476_s9 = spop %6475 }
 0x678   :  { %v4920_v24 = vstv %s6476_s9 }
 0x679   :  { %4921 = vst [vmem:[#allocation10] sm:$0x1] %v4920_v24 }
 0x67a   :  { %6583 = shalt.err (!%p6580_p10)
}
 0x67b   :  { %4931 = dma.vmem_to_hbm [thread:$0]  %s4929_s3, 16, %s7911_s4, [#allocation4]  }
 0x67c   :  { %6598 = dma.done.wait [#allocation4], 16  }
 0x67d   :  { %6599 = vsyncadd [#allocation4], 4294967280 }
 0x67e   :  { %4935 = vsyncpa [#allocation3], 1 }
 0x67f   :  { %4936 = vsyncpa [#allocation6], 1 }
 0x680   :  { %4937 = vsyncpa [#allocation9], 1 }
 0x681   :  { %4938 = vsyncpa [#allocation4], 1 }

</bundles_post_ra>
